<compile_context>
chip_gen: v7x
topology: tpu7x:2x2x1
jax: 0.10.0
libtpu: 0.0.40
codegen_flags: <defaults>
</compile_context>

<pallas_src>
import math
import functools

import jax
import jax.numpy as jnp
from jax.experimental import pallas as pl
from jax.experimental.pallas import tpu as pltpu

COMPUTE_DTYPE = jnp.bfloat16           # MXU operand / activation-stream dtype
_VMEM_LIMIT = 48 * 1024 * 1024         # stays under v7x's 64 MiB physical VMEM

_ROW_TILES = (512, 256, 128, 64, 32, 16, 8)   # sublane-axis tiles (multiples of 8)
_LANE_TILES = (512, 256, 128)                 # lane-axis tiles (multiples of 128)
_Q_TILES = (256, 128, 64, 32, 16, 8)
_KV_TILES = (512, 256, 128)


def _pick_tile(dim, candidates):
    for t in candidates:
        if t <= dim and dim % t == 0:
            return t
    return dim                                  # full (untiled) dim fallback


def _round_up(x, m):
    return ((x + m - 1) // m) * m


def _pad_2d(x, rows, cols):
    r, c = x.shape
    if r == rows and c == cols:
        return x
    return jnp.pad(x, ((0, rows - r), (0, cols - c)))


# ----------------------------- Linear kernels -----------------------------

def _linear_kernel(x_ref, w_ref, b_ref, o_ref, acc_ref, *, activation):
    @pl.when(pl.program_id(2) == 0)
    def _():
        acc_ref[...] = jnp.zeros_like(acc_ref)

    acc_ref[...] += jnp.dot(x_ref[...], w_ref[...],
                            preferred_element_type=jnp.float32)

    @pl.when(pl.program_id(2) == pl.num_programs(2) - 1)
    def _():
        y = acc_ref[...] + b_ref[...].astype(jnp.float32)
        if activation == "relu":
            y = jnp.maximum(y, 0.0)
        o_ref[...] = y.astype(o_ref.dtype)


def _linear_extra_kernel(x_ref, w_ref, b_ref, e_ref, o_ref, acc_ref, *, activation):
    @pl.when(pl.program_id(2) == 0)
    def _():
        acc_ref[...] = jnp.zeros_like(acc_ref)

    acc_ref[...] += jnp.dot(x_ref[...], w_ref[...],
                            preferred_element_type=jnp.float32)

    @pl.when(pl.program_id(2) == pl.num_programs(2) - 1)
    def _():
        y = (acc_ref[...] + b_ref[...].astype(jnp.float32)
             + e_ref[...].astype(jnp.float32))
        if activation == "relu":
            y = jnp.maximum(y, 0.0)
        o_ref[...] = y.astype(o_ref.dtype)


def pallas_linear(x, w, b, activation="none", extra=None, extra_row_period=None,
                  out_dtype=None):
    """y = act(x @ w + b [+ extra]); x:(M,K), w:(K,N), b:(N,).

    extra: optional (M, N) addend, or a row-periodic (P, N) table (P | M) when
    extra_row_period=P (e.g. the positional-encoding table).  Non-aligned
    M/K/N are zero-padded to (8,128)-friendly tiles and the result is sliced
    back, so accumulators and stores stay lane-dense.
    """
    M, K = x.shape
    Kw, N = w.shape
    assert K == Kw
    out_dtype = x.dtype if out_dtype is None else out_dtype

    x = x.astype(COMPUTE_DTYPE)           # one wrapper cast, halves HBM reads vs f32
    w = w.astype(COMPUTE_DTYPE)

    Kp = _round_up(K, 128)
    Np = _round_up(N, 128)
    tk = _pick_tile(Kp, _LANE_TILES)
    tn = _pick_tile(Np, _LANE_TILES)

    periodic = extra is not None and extra_row_period is not None
    if periodic:
        P = extra_row_period
        assert extra.shape == (P, N) and M % P == 0 and P % 8 == 0
        Mp = M
        tm = _pick_tile(P, _ROW_TILES)
    else:
        Mp = _round_up(M, 8)
        tm = _pick_tile(Mp, _ROW_TILES)

    # expose >= 2 parallel output blocks so both v7x TensorCores get work
    while (Mp // tm) * (Np // tn) < 2 and tm > 8:
        tm //= 2

    xp = _pad_2d(x, Mp, Kp)
    wp = _pad_2d(w, Kp, Np)
    bp = _pad_2d(b.reshape(1, N).astype(jnp.float32), 1, Np)

    grid = (Mp // tm, Np // tn, Kp // tk)

    in_specs = [
        pl.BlockSpec((tm, tk), lambda i, j, k: (i, k)),
        pl.BlockSpec((tk, tn), lambda i, j, k: (k, j)),
        pl.BlockSpec((1, tn), lambda i, j, k: (0, j)),
    ]
    inputs = [xp, wp, bp]

    if extra is not None:
        if periodic:
            ep = _pad_2d(extra.astype(COMPUTE_DTYPE), P, Np)
            blocks_per_period = P // tm
            in_specs.append(pl.BlockSpec(
                (tm, tn), lambda i, j, k: (i % blocks_per_period, j)))
        else:
            ep = _pad_2d(extra.astype(COMPUTE_DTYPE), Mp, Np)
            in_specs.append(pl.BlockSpec((tm, tn), lambda i, j, k: (i, j)))
        inputs.append(ep)
        kernel = functools.partial(_linear_extra_kernel, activation=activation)
    else:
        kernel = functools.partial(_linear_kernel, activation=activation)

    cost = pl.CostEstimate(
        flops=2 * Mp * Np * Kp,
        transcendentals=0,
        bytes_accessed=xp.size * 2 + wp.size * 2
                       + Mp * Np * jnp.dtype(out_dtype).itemsize)

    out = pl.pallas_call(
        kernel,
        out_shape=jax.ShapeDtypeStruct((Mp, Np), out_dtype),
        grid=grid,
        in_specs=in_specs,
        out_specs=pl.BlockSpec((tm, tn), lambda i, j, k: (i, j)),
        scratch_shapes=[pltpu.VMEM((tm, tn), jnp.float32)],
        compiler_params=pltpu.CompilerParams(
            dimension_semantics=("parallel", "parallel", "arbitrary"),
            vmem_limit_bytes=_VMEM_LIMIT),
        cost_estimate=cost,
    )(*inputs)

    if (Mp, Np) != (M, N):
        out = out[:M, :N]
    return out


# ------------------- Linear + residual + LayerNorm (fused) -----------------

def _linear_res_ln_kernel(x_ref, w_ref, b_ref, r_ref, g_ref, beta_ref, o_ref,
                          acc_ref, *, eps):
    @pl.when(pl.program_id(1) == 0)
    def _():
        acc_ref[...] = jnp.zeros_like(acc_ref)

    acc_ref[...] += jnp.dot(x_ref[...], w_ref[...],
                            preferred_element_type=jnp.float32)

    @pl.when(pl.program_id(1) == pl.num_programs(1) - 1)
    def _():
        y = (acc_ref[...] + b_ref[...].astype(jnp.float32)
             + r_ref[...].astype(jnp.float32))
        mean = jnp.mean(y, axis=-1, keepdims=True)
        var = jnp.mean(jnp.square(y - mean), axis=-1, keepdims=True)
        yn = (y - mean) * jax.lax.rsqrt(var + eps)
        o_ref[...] = (yn * g_ref[...].astype(jnp.float32)
                      + beta_ref[...].astype(jnp.float32)).astype(o_ref.dtype)


def pallas_linear_residual_ln(x, w, b, residual, gamma, beta,
                              out_dtype=None, eps=1e-5):
    """LayerNorm(residual + x @ w + b); LN over the full output width N."""
    M, K = x.shape
    Kw, N = w.shape
    assert K == Kw and residual.shape == (M, N)
    out_dtype = residual.dtype if out_dtype is None else out_dtype

    x = x.astype(COMPUTE_DTYPE)
    w = w.astype(COMPUTE_DTYPE)

    Kp = _round_up(K, 128)
    tk = _pick_tile(Kp, _LANE_TILES)
    Mp = _round_up(M, 8)
    tm = _pick_tile(Mp, _ROW_TILES)
    while (Mp // tm) < 2 and tm > 8:          # megacore-friendly row blocking
        tm //= 2

    xp = _pad_2d(x, Mp, Kp)
    wp = _pad_2d(w, Kp, N)
    rp = _pad_2d(residual, Mp, N)             # padded rows are junk, sliced off below

    grid = (Mp // tm, Kp // tk)

    out = pl.pallas_call(
        functools.partial(_linear_res_ln_kernel, eps=eps),
        out_shape=jax.ShapeDtypeStruct((Mp, N), out_dtype),
        grid=grid,
        in_specs=[
            pl.BlockSpec((tm, tk), lambda i, k: (i, k)),
            pl.BlockSpec((tk, N), lambda i, k: (k, 0)),
            pl.BlockSpec((1, N), lambda i, k: (0, 0)),
            pl.BlockSpec((tm, N), lambda i, k: (i, 0)),
            pl.BlockSpec((1, N), lambda i, k: (0, 0)),
            pl.BlockSpec((1, N), lambda i, k: (0, 0)),
        ],
        out_specs=pl.BlockSpec((tm, N), lambda i, k: (i, 0)),
        scratch_shapes=[pltpu.VMEM((tm, N), jnp.float32)],
        compiler_params=pltpu.CompilerParams(
            dimension_semantics=("parallel", "arbitrary"),
            vmem_limit_bytes=_VMEM_LIMIT),
        cost_estimate=pl.CostEstimate(
            flops=2 * Mp * N * Kp, transcendentals=0,
            bytes_accessed=xp.size * 2 + wp.size * 2 + rp.size * 2 + Mp * N * 2),
    )(xp, wp, b.reshape(1, N).astype(jnp.float32), rp,
      gamma.reshape(1, N).astype(jnp.float32),
      beta.reshape(1, N).astype(jnp.float32))

    if Mp != M:
        out = out[:M]
    return out


# ------------------------------ LayerNorm ----------------------------------

def _ln_kernel(x_ref, g_ref, b_ref, o_ref, *, eps):
    x = x_ref[...].astype(jnp.float32)
    mean = jnp.mean(x, axis=-1, keepdims=True)
    var = jnp.mean(jnp.square(x - mean), axis=-1, keepdims=True)
    y = (x - mean) * jax.lax.rsqrt(var + eps)
    o_ref[...] = (y * g_ref[...].astype(jnp.float32)
                  + b_ref[...].astype(jnp.float32)).astype(o_ref.dtype)


def pallas_layernorm(x, gamma, beta, eps=1e-5):
    M, D = x.shape
    Mp = _round_up(M, 8)
    tm = _pick_tile(Mp, _ROW_TILES)
    while (Mp // tm) < 2 and tm > 8:
        tm //= 2
    xp = _pad_2d(x, Mp, D)
    out = pl.pallas_call(
        functools.partial(_ln_kernel, eps=eps),
        out_shape=jax.ShapeDtypeStruct((Mp, D), x.dtype),
        grid=(Mp // tm,),
        in_specs=[pl.BlockSpec((tm, D), lambda i: (i, 0)),
                  pl.BlockSpec((1, D), lambda i: (0, 0)),
                  pl.BlockSpec((1, D), lambda i: (0, 0))],
        out_specs=pl.BlockSpec((tm, D), lambda i: (i, 0)),
        compiler_params=pltpu.CompilerParams(
            dimension_semantics=("parallel",),
            vmem_limit_bytes=_VMEM_LIMIT),
    )(xp, gamma.reshape(1, D).astype(jnp.float32),
      beta.reshape(1, D).astype(jnp.float32))
    if Mp != M:
        out = out[:M]
    return out


# ----------------------- Flash multi-head self-attention -------------------

def _flash_attn_kernel(q_ref, k_ref, v_ref, bias_ref, o_ref, m_sc, l_sc, acc_sc):
    kv = pl.program_id(3)

    @pl.when(kv == 0)
    def _():
        m_sc[...] = jnp.full_like(m_sc, -jnp.inf)
        l_sc[...] = jnp.zeros_like(l_sc)
        acc_sc[...] = jnp.zeros_like(acc_sc)

    q = q_ref[0, 0]                           # (tq, dk)  bf16 — no f32 slab upcast
    k = k_ref[0, 0]                           # (tkv, dk) bf16
    v = v_ref[0, 0]                           # (tkv, dk) bf16

    # scores: contract dk directly (no transpose); 1/sqrt(dk) folded into Wq at init
    s = jax.lax.dot_general(q, k, (((1,), (1,)), ((), ())),
                            preferred_element_type=jnp.float32)      # (tq, tkv) f32
    s = s + bias_ref[0]                                              # (1, tkv) key-pad bias

    m_prev = m_sc[...]
    m_new = jnp.maximum(m_prev, jnp.max(s, axis=-1, keepdims=True))
    alpha = jnp.exp(m_prev - m_new)
    p = jnp.exp(s - m_new)
    l_sc[...] = alpha * l_sc[...] + jnp.sum(p, axis=-1, keepdims=True)
    acc_sc[...] = alpha * acc_sc[...] + jnp.dot(p.astype(v.dtype), v,
                                                preferred_element_type=jnp.float32)
    m_sc[...] = m_new

    @pl.when(kv == pl.num_programs(3) - 1)
    def _():
        inv_l = pl.reciprocal(l_sc[...], approx=True)
        o_ref[0, 0] = (acc_sc[...] * inv_l).astype(o_ref.dtype)


def pallas_flash_attention(q, k, v, key_bias):
    """q,k,v: (B, H, T, dk) bf16; key_bias: (B, 1, T) f32 additive. -> (B, H, T, dk)."""
    B, H, T, dk = q.shape
    tq = _pick_tile(T, _Q_TILES)              # falls back to full T for tiny/odd T
    tkv = _pick_tile(T, _KV_TILES)
    grid = (B, H, T // tq, T // tkv)

    cost = pl.CostEstimate(
        flops=4 * B * H * T * T * dk,
        transcendentals=B * H * T * T,
        bytes_accessed=3 * q.size * 2 + q.size * 2)

    return pl.pallas_call(
        _flash_attn_kernel,
        out_shape=jax.ShapeDtypeStruct((B, H, T, dk), q.dtype),
        grid=grid,
        in_specs=[
            pl.BlockSpec((1, 1, tq, dk), lambda b, h, qi, ki: (b, h, qi, 0)),
            pl.BlockSpec((1, 1, tkv, dk), lambda b, h, qi, ki: (b, h, ki, 0)),
            pl.BlockSpec((1, 1, tkv, dk), lambda b, h, qi, ki: (b, h, ki, 0)),
            pl.BlockSpec((1, 1, tkv), lambda b, h, qi, ki: (b, 0, ki)),
        ],
        out_specs=pl.BlockSpec((1, 1, tq, dk), lambda b, h, qi, ki: (b, h, qi, 0)),
        scratch_shapes=[pltpu.VMEM((tq, 1), jnp.float32),
                        pltpu.VMEM((tq, 1), jnp.float32),
                        pltpu.VMEM((tq, dk), jnp.float32)],
        compiler_params=pltpu.CompilerParams(
            dimension_semantics=("parallel", "parallel", "parallel", "arbitrary"),
            vmem_limit_bytes=_VMEM_LIMIT),
        cost_estimate=cost,
    )(q, k, v, key_bias)


# ----------------------------- Parameter init -----------------------------

def _xavier(key, fan_in, fan_out):
    limit = math.sqrt(6.0 / (fan_in + fan_out))
    return jax.random.uniform(key, (fan_in, fan_out), jnp.float32, -limit, limit)


def init_params(key, d_input, d_model, d_inner, n_head, n_layer, n_vocab):
    params = {}
    keys = jax.random.split(key, 4 + 6 * n_layer)
    ki = iter(range(len(keys)))
    dk = d_model // n_head

    # input embedding: fold the * sqrt(d_model) scale into the weight (bias zero)
    scale = math.sqrt(d_model)
    params["emb_w"] = (_xavier(keys[next(ki)], d_input, d_model) * scale).astype(COMPUTE_DTYPE)
    params["emb_b"] = jnp.zeros((d_model,), jnp.float32)

    layers = []
    for _ in range(n_layer):
        # fold the 1/sqrt(dk) attention scale into the Q projection weights
        wq = _xavier(keys[next(ki)], d_model, d_model) * (1.0 / math.sqrt(dk))
        wk = _xavier(keys[next(ki)], d_model, d_model)
        wv = _xavier(keys[next(ki)], d_model, d_model)
        lp = {
            "wqkv": jnp.concatenate([wq, wk, wv], axis=1).astype(COMPUTE_DTYPE),
            "bqkv": jnp.zeros((3 * d_model,), jnp.float32),
            "wo": _xavier(keys[next(ki)], d_model, d_model).astype(COMPUTE_DTYPE),
            "bo": jnp.zeros((d_model,), jnp.float32),
            "ln1_g": jnp.ones((d_model,), jnp.float32),
            "ln1_b": jnp.zeros((d_model,), jnp.float32),
            "w1": _xavier(keys[next(ki)], d_model, d_inner).astype(COMPUTE_DTYPE),
            "b1": jnp.zeros((d_inner,), jnp.float32),
            "w2": _xavier(keys[next(ki)], d_inner, d_model).astype(COMPUTE_DTYPE),
            "b2": jnp.zeros((d_model,), jnp.float32),
            "ln2_g": jnp.ones((d_model,), jnp.float32),
            "ln2_b": jnp.zeros((d_model,), jnp.float32),
        }
        layers.append(lp)
    params["layers"] = layers

    params["ln_f_g"] = jnp.ones((d_model,), jnp.float32)
    params["ln_f_b"] = jnp.zeros((d_model,), jnp.float32)

    params["out_w"] = _xavier(keys[next(ki)], d_model, n_vocab).astype(COMPUTE_DTYPE)
    params["out_b"] = jnp.zeros((n_vocab,), jnp.float32)
    return params


def sinusoidal_pos(T, D):
    pos = jnp.arange(T, dtype=jnp.float32)[:, None]
    i = jnp.arange(D // 2, dtype=jnp.float32)[None, :]
    angle = pos / jnp.power(10000.0, 2.0 * i / D)
    pe = jnp.zeros((T, D), jnp.float32)
    pe = pe.at[:, 0::2].set(jnp.sin(angle))
    pe = pe.at[:, 1::2].set(jnp.cos(angle))
    return pe


# ------------------------------- Forward ----------------------------------

def self_attn_net_forward(params, seq, mask, n_head):
    """seq: (B, T, d_input) float32; mask: (B, T) int (1 = valid, 0 = pad)."""
    B, T, d_input = seq.shape
    d_model = params["ln_f_g"].shape[0]
    dk = d_model // n_head

    seq = seq.astype(COMPUTE_DTYPE)           # single wrapper cast (halves HBM reads)

    # positional encoding kept as a single (T, d_model) bf16 table; added in the
    # embedding matmul epilogue through a row-periodic index_map (no B*T*D broadcast)
    pe = sinusoidal_pos(T, d_model).astype(COMPUTE_DTYPE)
    if T % 8 == 0:
        h = pallas_linear(seq.reshape(B * T, d_input), params["emb_w"], params["emb_b"],
                          extra=pe, extra_row_period=T, out_dtype=COMPUTE_DTYPE)
    else:
        h = pallas_linear(seq.reshape(B * T, d_input), params["emb_w"], params["emb_b"],
                          extra=jnp.tile(pe, (B, 1)), out_dtype=COMPUTE_DTYPE)

    # additive key-padding bias shared across heads and query positions: (B, 1, T)
    key_bias = jnp.where(mask == 0, -1e9, 0.0).astype(jnp.float32)[:, None, :]

    for lp in params["layers"]:
        # fused QKV projection (1/sqrt(dk) already folded into the Q weights)
        qkv = pallas_linear(h, lp["wqkv"], lp["bqkv"], out_dtype=COMPUTE_DTYPE)
        qkv = qkv.reshape(B, T, 3, n_head, dk)
        # layout plumbing only: present lane-dense per-head (T, dk) slabs to the kernel
        q = jnp.transpose(qkv[:, :, 0], (0, 2, 1, 3))          # (B, H, T, dk)
        k = jnp.transpose(qkv[:, :, 1], (0, 2, 1, 3))
        v = jnp.transpose(qkv[:, :, 2], (0, 2, 1, 3))
        attn = pallas_flash_attention(q, k, v, key_bias)       # (B, H, T, dk)
        attn = jnp.transpose(attn, (0, 2, 1, 3)).reshape(B * T, d_model)

        # Wo projection with residual-add + LayerNorm fused into the finalize
        h = pallas_linear_residual_ln(attn, lp["wo"], lp["bo"], h,
                                      lp["ln1_g"], lp["ln1_b"],
                                      out_dtype=COMPUTE_DTYPE)   # LN(h + Wo(attn))

        # position-wise FFN; second matmul fuses residual + LayerNorm
        f = pallas_linear(h, lp["w1"], lp["b1"], activation="relu",
                          out_dtype=COMPUTE_DTYPE)
        h = pallas_linear_residual_ln(f, lp["w2"], lp["b2"], h,
                                      lp["ln2_g"], lp["ln2_b"],
                                      out_dtype=COMPUTE_DTYPE)   # LN(h + W2(f))

    h = pallas_layernorm(h, params["ln_f_g"], params["ln_f_b"])

    # project is None (d_project == d_model); output linear -> logits (f32)
    logits = pallas_linear(h, params["out_w"], params["out_b"], out_dtype=jnp.float32)
    logits = logits.reshape(B, T, -1)
    return logits, mask
    # TODO(synk): use_cnn / time_ds>1 / rel_pos / unidirectional causal-mask paths of
    # AttnEncoder are not exercised by the default constructor args and are omitted.


# --------------------------------- Main ------------------------------------

if __name__ == "__main__":
    B, T = 2, 8
    d_input, d_model, d_inner = 40, 32, 64
    n_head, n_layer, n_vocab = 4, 2, 16

    root = jax.random.PRNGKey(0)
    k_param, k_seq = jax.random.split(root)

    params = init_params(k_param, d_input, d_model, d_inner, n_head, n_layer, n_vocab)
    seq = jax.random.normal(k_seq, (B, T, d_input), jnp.float32)
    mask = jnp.ones((B, T), jnp.int32).at[1, T - 2:].set(0)   # 2 pad frames in sample 1

    fwd = jax.jit(functools.partial(self_attn_net_forward, n_head=n_head))
    logits, out_mask = fwd(params, seq, mask)
    jax.block_until_ready(logits)

    assert logits.shape == (B, T, n_vocab)
    assert out_mask.shape == (B, T)
    assert bool(jnp.all(jnp.isfinite(logits)))
    print("KERNEL_OK")
</pallas_src>

<mosaic_0001>
module attributes {stable_mosaic.version = 11 : i64} {
  func.func @_linear_extra_kernel(%arg0: i32, %arg1: i32, %arg2: i32, %arg3: memref<8x128xbf16, #tpu.memory_space<vmem>>, %arg4: memref<128x128xbf16, #tpu.memory_space<vmem>>, %arg5: memref<1x128xf32, #tpu.memory_space<vmem>>, %arg6: memref<8x128xbf16, #tpu.memory_space<vmem>>, %arg7: memref<8x128xbf16, #tpu.memory_space<vmem>>, %arg8: memref<8x128xf32, #tpu.memory_space<vmem>>) attributes {dimension_semantics = [#tpu.dimension_semantics<parallel>, #tpu.dimension_semantics<parallel>, #tpu.dimension_semantics<arbitrary>], iteration_bounds = array<i64: 2, 1, 1>, scalar_prefetch = 0 : i64, scratch_operands = 1 : i64, tpu.core_type = #tpu.core_type<tc>, window_params = [{transform_indices = @transform_0, window_bounds = array<i64: 8, 128>}, {transform_indices = @transform_1, window_bounds = array<i64: 128, 128>}, {transform_indices = @transform_2, window_bounds = array<i64: 1, 128>}, {transform_indices = @transform_3, window_bounds = array<i64: 8, 128>}, {transform_indices = @transform_4, window_bounds = array<i64: 8, 128>}]} {
    %c0_i32 = arith.constant 0 : i32
    %0 = arith.cmpi eq, %arg2, %c0_i32 : i32
    %1 = arith.extui %0 : i1 to i32
    %c0_i32_0 = arith.constant 0 : i32
    %2 = arith.cmpi ne, %1, %c0_i32_0 : i32
    scf.if %2 {
      %cst_10 = arith.constant 0.000000e+00 : f32
      %12 = vector.broadcast %cst_10 : f32 to vector<8x128xf32>
      %c0_11 = arith.constant 0 : index
      %c0_12 = arith.constant 0 : index
      %13 = vector.load %arg8[%c0_11, %c0_12] : memref<8x128xf32, #tpu.memory_space<vmem>>, vector<8x128xf32>
      tpu.vector_store %arg8[%c0_11, %c0_12], %12 {strides = array<i32>} : memref<8x128xf32, #tpu.memory_space<vmem>>, vector<8x128xf32>,
    } else {
    }
    %c0 = arith.constant 0 : index
    %c0_1 = arith.constant 0 : index
    %3 = vector.load %arg8[%c0, %c0_1] : memref<8x128xf32, #tpu.memory_space<vmem>>, vector<8x128xf32>
    %c0_2 = arith.constant 0 : index
    %c0_3 = arith.constant 0 : index
    %4 = vector.load %arg3[%c0_2, %c0_3] : memref<8x128xbf16, #tpu.memory_space<vmem>>, vector<8x128xbf16>
    %c0_4 = arith.constant 0 : index
    %c0_5 = arith.constant 0 : index
    %5 = vector.load %arg4[%c0_4, %c0_5] : memref<128x128xbf16, #tpu.memory_space<vmem>>, vector<128x128xbf16>
    %cst = arith.constant dense<0.000000e+00> : vector<8x128xf32>
    %6 = tpu.matmul %4, %5, %cst {dimension_numbers = #tpu.dot_dimension_numbers<[1], [0], [0], [1], [0, 0, 1, 1], [], []>} : vector<8x128xbf16>, vector<128x128xbf16>, vector<8x128xf32> -> vector<8x128xf32>
    %7 = arith.addf %3, %6 : vector<8x128xf32>
    %c0_6 = arith.constant 0 : index
    %c0_7 = arith.constant 0 : index
    %8 = vector.load %arg8[%c0_6, %c0_7] : memref<8x128xf32, #tpu.memory_space<vmem>>, vector<8x128xf32>
    tpu.vector_store %arg8[%c0_6, %c0_7], %7 {strides = array<i32>} : memref<8x128xf32, #tpu.memory_space<vmem>>, vector<8x128xf32>,
    %c0_i32_8 = arith.constant 0 : i32
    %9 = arith.cmpi eq, %arg2, %c0_i32_8 : i32
    %10 = arith.extui %9 : i1 to i32
    %c0_i32_9 = arith.constant 0 : i32
    %11 = arith.cmpi ne, %10, %c0_i32_9 : i32
    scf.if %11 {
      %c0_10 = arith.constant 0 : index
      %c0_11 = arith.constant 0 : index
      %12 = vector.load %arg8[%c0_10, %c0_11] : memref<8x128xf32, #tpu.memory_space<vmem>>, vector<8x128xf32>
      %c0_12 = arith.constant 0 : index
      %c0_13 = arith.constant 0 : index
      %13 = vector.load %arg5[%c0_12, %c0_13] : memref<1x128xf32, #tpu.memory_space<vmem>>, vector<1x128xf32>
      %14 = vector.broadcast %13 : vector<1x128xf32> to vector<8x128xf32>
      %15 = arith.addf %12, %14 : vector<8x128xf32>
      %c0_14 = arith.constant 0 : index
      %c0_15 = arith.constant 0 : index
      %16 = vector.load %arg6[%c0_14, %c0_15] : memref<8x128xbf16, #tpu.memory_space<vmem>>, vector<8x128xbf16>
      %17 = arith.extf %16 : vector<8x128xbf16> to vector<8x128xf32>
      %18 = arith.addf %15, %17 : vector<8x128xf32>
      %19 = arith.truncf %18 : vector<8x128xf32> to vector<8x128xbf16>
      %c0_16 = arith.constant 0 : index
      %c0_17 = arith.constant 0 : index
      %20 = vector.load %arg7[%c0_16, %c0_17] : memref<8x128xbf16, #tpu.memory_space<vmem>>, vector<8x128xbf16>
      tpu.vector_store %arg7[%c0_16, %c0_17], %19 {strides = array<i32>} : memref<8x128xbf16, #tpu.memory_space<vmem>>, vector<8x128xbf16>,
    } else {
    }
    return
  }
  func.func @transform_0(%arg0: i32, %arg1: i32, %arg2: i32) -> (i32, i32) {
    %c0_i32 = arith.constant 0 : i32
    return %arg0, %arg2 : i32, i32
  }
  func.func @transform_1(%arg0: i32, %arg1: i32, %arg2: i32) -> (i32, i32) {
    %c0_i32 = arith.constant 0 : i32
    return %arg2, %arg1 : i32, i32
  }
  func.func @transform_2(%arg0: i32, %arg1: i32, %arg2: i32) -> (i32, i32) {
    %c0_i32 = arith.constant 0 : i32
    %c0_i32_0 = arith.constant 0 : i32
    return %c0_i32, %arg1 : i32, i32
  }
  func.func @transform_3(%arg0: i32, %arg1: i32, %arg2: i32) -> (i32, i32) {
    %c1_i32 = arith.constant 1 : i32
    %c0_i32 = arith.constant 0 : i32
    %0 = arith.cmpi eq, %c1_i32, %c0_i32 : i32
    %c1_i32_0 = arith.constant 1 : i32
    %1 = arith.select %0, %c1_i32_0, %c1_i32 : i32
    %2 = arith.remsi %arg0, %1 : i32
    %c0_i32_1 = arith.constant 0 : i32
    %3 = arith.cmpi ne, %2, %c0_i32_1 : i32
    %c0_i32_2 = arith.constant 0 : i32
    %4 = arith.cmpi slt, %2, %c0_i32_2 : i32
    %c0_i32_3 = arith.constant 0 : i32
    %5 = arith.cmpi slt, %1, %c0_i32_3 : i32
    %6 = arith.xori %4, %5 : i1
    %7 = arith.andi %6, %3 : i1
    %8 = arith.addi %2, %1 : i32
    %9 = arith.select %7, %8, %2 : i32
    %c0_i32_4 = arith.constant 0 : i32
    return %9, %arg1 : i32, i32
  }
  func.func @transform_4(%arg0: i32, %arg1: i32, %arg2: i32) -> (i32, i32) {
    %c0_i32 = arith.constant 0 : i32
    return %arg0, %arg1 : i32, i32
  }
}

module attributes {stable_mosaic.version = 11 : i64} {
  func.func @_linear_kernel(%arg0: i32, %arg1: i32, %arg2: i32, %arg3: memref<8x128xbf16, #tpu.memory_space<vmem>>, %arg4: memref<128x128xbf16, #tpu.memory_space<vmem>>, %arg5: memref<1x128xf32, #tpu.memory_space<vmem>>, %arg6: memref<8x128xbf16, #tpu.memory_space<vmem>>, %arg7: memref<8x128xf32, #tpu.memory_space<vmem>>) attributes {dimension_semantics = [#tpu.dimension_semantics<parallel>, #tpu.dimension_semantics<parallel>, #tpu.dimension_semantics<arbitrary>], iteration_bounds = array<i64: 2, 1, 1>, scalar_prefetch = 0 : i64, scratch_operands = 1 : i64, tpu.core_type = #tpu.core_type<tc>, window_params = [{transform_indices = @transform_0, window_bounds = array<i64: 8, 128>}, {transform_indices = @transform_1, window_bounds = array<i64: 128, 128>}, {transform_indices = @transform_2, window_bounds = array<i64: 1, 128>}, {transform_indices = @transform_3, window_bounds = array<i64: 8, 128>}]} {
    %c0_i32 = arith.constant 0 : i32
    %0 = arith.cmpi eq, %arg2, %c0_i32 : i32
    %1 = arith.extui %0 : i1 to i32
    %c0_i32_0 = arith.constant 0 : i32
    %2 = arith.cmpi ne, %1, %c0_i32_0 : i32
    scf.if %2 {
      %cst_10 = arith.constant 0.000000e+00 : f32
      %12 = vector.broadcast %cst_10 : f32 to vector<8x128xf32>
      %c0_11 = arith.constant 0 : index
      %c0_12 = arith.constant 0 : index
      %13 = vector.load %arg7[%c0_11, %c0_12] : memref<8x128xf32, #tpu.memory_space<vmem>>, vector<8x128xf32>
      tpu.vector_store %arg7[%c0_11, %c0_12], %12 {strides = array<i32>} : memref<8x128xf32, #tpu.memory_space<vmem>>, vector<8x128xf32>,
    } else {
    }
    %c0 = arith.constant 0 : index
    %c0_1 = arith.constant 0 : index
    %3 = vector.load %arg7[%c0, %c0_1] : memref<8x128xf32, #tpu.memory_space<vmem>>, vector<8x128xf32>
    %c0_2 = arith.constant 0 : index
    %c0_3 = arith.constant 0 : index
    %4 = vector.load %arg3[%c0_2, %c0_3] : memref<8x128xbf16, #tpu.memory_space<vmem>>, vector<8x128xbf16>
    %c0_4 = arith.constant 0 : index
    %c0_5 = arith.constant 0 : index
    %5 = vector.load %arg4[%c0_4, %c0_5] : memref<128x128xbf16, #tpu.memory_space<vmem>>, vector<128x128xbf16>
    %cst = arith.constant dense<0.000000e+00> : vector<8x128xf32>
    %6 = tpu.matmul %4, %5, %cst {dimension_numbers = #tpu.dot_dimension_numbers<[1], [0], [0], [1], [0, 0, 1, 1], [], []>} : vector<8x128xbf16>, vector<128x128xbf16>, vector<8x128xf32> -> vector<8x128xf32>
    %7 = arith.addf %3, %6 : vector<8x128xf32>
    %c0_6 = arith.constant 0 : index
    %c0_7 = arith.constant 0 : index
    %8 = vector.load %arg7[%c0_6, %c0_7] : memref<8x128xf32, #tpu.memory_space<vmem>>, vector<8x128xf32>
    tpu.vector_store %arg7[%c0_6, %c0_7], %7 {strides = array<i32>} : memref<8x128xf32, #tpu.memory_space<vmem>>, vector<8x128xf32>,
    %c0_i32_8 = arith.constant 0 : i32
    %9 = arith.cmpi eq, %arg2, %c0_i32_8 : i32
    %10 = arith.extui %9 : i1 to i32
    %c0_i32_9 = arith.constant 0 : i32
    %11 = arith.cmpi ne, %10, %c0_i32_9 : i32
    scf.if %11 {
      %c0_10 = arith.constant 0 : index
      %c0_11 = arith.constant 0 : index
      %12 = vector.load %arg7[%c0_10, %c0_11] : memref<8x128xf32, #tpu.memory_space<vmem>>, vector<8x128xf32>
      %c0_12 = arith.constant 0 : index
      %c0_13 = arith.constant 0 : index
      %13 = vector.load %arg5[%c0_12, %c0_13] : memref<1x128xf32, #tpu.memory_space<vmem>>, vector<1x128xf32>
      %14 = vector.broadcast %13 : vector<1x128xf32> to vector<8x128xf32>
      %15 = arith.addf %12, %14 : vector<8x128xf32>
      %16 = arith.truncf %15 : vector<8x128xf32> to vector<8x128xbf16>
      %c0_14 = arith.constant 0 : index
      %c0_15 = arith.constant 0 : index
      %17 = vector.load %arg6[%c0_14, %c0_15] : memref<8x128xbf16, #tpu.memory_space<vmem>>, vector<8x128xbf16>
      tpu.vector_store %arg6[%c0_14, %c0_15], %16 {strides = array<i32>} : memref<8x128xbf16, #tpu.memory_space<vmem>>, vector<8x128xbf16>,
    } else {
    }
    return
  }
  func.func @transform_0(%arg0: i32, %arg1: i32, %arg2: i32) -> (i32, i32) {
    %c0_i32 = arith.constant 0 : i32
    return %arg0, %arg2 : i32, i32
  }
  func.func @transform_1(%arg0: i32, %arg1: i32, %arg2: i32) -> (i32, i32) {
    %c0_i32 = arith.constant 0 : i32
    return %arg2, %arg1 : i32, i32
  }
  func.func @transform_2(%arg0: i32, %arg1: i32, %arg2: i32) -> (i32, i32) {
    %c0_i32 = arith.constant 0 : i32
    %c0_i32_0 = arith.constant 0 : i32
    return %c0_i32, %arg1 : i32, i32
  }
  func.func @transform_3(%arg0: i32, %arg1: i32, %arg2: i32) -> (i32, i32) {
    %c0_i32 = arith.constant 0 : i32
    return %arg0, %arg1 : i32, i32
  }
}

module attributes {stable_mosaic.version = 11 : i64} {
  func.func @_flash_attn_kernel(%arg0: i32, %arg1: i32, %arg2: i32, %arg3: i32, %arg4: memref<1x1x8x8xbf16, #tpu.memory_space<vmem>>, %arg5: memref<1x1x8x8xbf16, #tpu.memory_space<vmem>>, %arg6: memref<1x1x8x8xbf16, #tpu.memory_space<vmem>>, %arg7: memref<1x1x8xf32, #tpu.memory_space<vmem>>, %arg8: memref<1x1x8x8xbf16, #tpu.memory_space<vmem>>, %arg9: memref<8x1xf32, #tpu.memory_space<vmem>>, %arg10: memref<8x1xf32, #tpu.memory_space<vmem>>, %arg11: memref<8x8xf32, #tpu.memory_space<vmem>>) attributes {dimension_semantics = [#tpu.dimension_semantics<parallel>, #tpu.dimension_semantics<parallel>, #tpu.dimension_semantics<parallel>, #tpu.dimension_semantics<arbitrary>], iteration_bounds = array<i64: 2, 4, 1, 1>, scalar_prefetch = 0 : i64, scratch_operands = 3 : i64, tpu.core_type = #tpu.core_type<tc>, window_params = [{transform_indices = @transform_0, window_bounds = array<i64: 1, 1, 8, 8>}, {transform_indices = @transform_1, window_bounds = array<i64: 1, 1, 8, 8>}, {transform_indices = @transform_2, window_bounds = array<i64: 1, 1, 8, 8>}, {transform_indices = @transform_3, window_bounds = array<i64: 1, 1, 8>}, {transform_indices = @transform_4, window_bounds = array<i64: 1, 1, 8, 8>}]} {
    %c0_i32 = arith.constant 0 : i32
    %0 = arith.cmpi eq, %arg3, %c0_i32 : i32
    %1 = arith.extui %0 : i1 to i32
    %c0_i32_0 = arith.constant 0 : i32
    %2 = arith.cmpi ne, %1, %c0_i32_0 : i32
    scf.if %2 {
      %cst_32 = arith.constant 0xFF800000 : f32
      %40 = vector.broadcast %cst_32 : f32 to vector<8x1xf32>
      %c0_33 = arith.constant 0 : index
      %c0_34 = arith.constant 0 : index
      %41 = vector.load %arg9[%c0_33, %c0_34] : memref<8x1xf32, #tpu.memory_space<vmem>>, vector<8x1xf32>
      tpu.vector_store %arg9[%c0_33, %c0_34], %40 {strides = array<i32>} : memref<8x1xf32, #tpu.memory_space<vmem>>, vector<8x1xf32>,
      %cst_35 = arith.constant 0.000000e+00 : f32
      %42 = vector.broadcast %cst_35 : f32 to vector<8x1xf32>
      %c0_36 = arith.constant 0 : index
      %c0_37 = arith.constant 0 : index
      %43 = vector.load %arg10[%c0_36, %c0_37] : memref<8x1xf32, #tpu.memory_space<vmem>>, vector<8x1xf32>
      tpu.vector_store %arg10[%c0_36, %c0_37], %42 {strides = array<i32>} : memref<8x1xf32, #tpu.memory_space<vmem>>, vector<8x1xf32>,
      %cst_38 = arith.constant 0.000000e+00 : f32
      %44 = vector.broadcast %cst_38 : f32 to vector<8x8xf32>
      %c0_39 = arith.constant 0 : index
      %c0_40 = arith.constant 0 : index
      %45 = vector.load %arg11[%c0_39, %c0_40] : memref<8x8xf32, #tpu.memory_space<vmem>>, vector<8x8xf32>
      tpu.vector_store %arg11[%c0_39, %c0_40], %44 {strides = array<i32>} : memref<8x8xf32, #tpu.memory_space<vmem>>, vector<8x8xf32>,
    } else {
    }
    %c0 = arith.constant 0 : index
    %c0_1 = arith.constant 0 : index
    %c0_2 = arith.constant 0 : index
    %c0_3 = arith.constant 0 : index
    %3 = vector.load %arg4[%c0, %c0_1, %c0_2, %c0_3] : memref<1x1x8x8xbf16, #tpu.memory_space<vmem>>, vector<1x1x8x8xbf16>
    %4 = vector.shape_cast %3 : vector<1x1x8x8xbf16> to vector<8x8xbf16>
    %c0_4 = arith.constant 0 : index
    %c0_5 = arith.constant 0 : index
    %c0_6 = arith.constant 0 : index
    %c0_7 = arith.constant 0 : index
    %5 = vector.load %arg5[%c0_4, %c0_5, %c0_6, %c0_7] : memref<1x1x8x8xbf16, #tpu.memory_space<vmem>>, vector<1x1x8x8xbf16>
    %6 = vector.shape_cast %5 : vector<1x1x8x8xbf16> to vector<8x8xbf16>
    %c0_8 = arith.constant 0 : index
    %c0_9 = arith.constant 0 : index
    %c0_10 = arith.constant 0 : index
    %c0_11 = arith.constant 0 : index
    %7 = vector.load %arg6[%c0_8, %c0_9, %c0_10, %c0_11] : memref<1x1x8x8xbf16, #tpu.memory_space<vmem>>, vector<1x1x8x8xbf16>
    %8 = vector.shape_cast %7 : vector<1x1x8x8xbf16> to vector<8x8xbf16>
    %cst = arith.constant dense<0.000000e+00> : vector<8x8xf32>
    %9 = tpu.matmul %4, %6, %cst {dimension_numbers = #tpu.dot_dimension_numbers<[1], [1], [0], [0], [0, 0, 1, 0], [], []>} : vector<8x8xbf16>, vector<8x8xbf16>, vector<8x8xf32> -> vector<8x8xf32>
    %c0_12 = arith.constant 0 : index
    %c0_13 = arith.constant 0 : index
    %c0_14 = arith.constant 0 : index
    %10 = vector.load %arg7[%c0_12, %c0_13, %c0_14] : memref<1x1x8xf32, #tpu.memory_space<vmem>>, vector<1x1x8xf32>
    %11 = vector.shape_cast %10 : vector<1x1x8xf32> to vector<1x8xf32>
    %12 = vector.broadcast %11 : vector<1x8xf32> to vector<8x8xf32>
    %13 = arith.addf %9, %12 : vector<8x8xf32>
    %c0_15 = arith.constant 0 : index
    %c0_16 = arith.constant 0 : index
    %14 = vector.load %arg9[%c0_15, %c0_16] : memref<8x1xf32, #tpu.memory_space<vmem>>, vector<8x1xf32>
    %cst_17 = arith.constant dense<0xFF800000> : vector<8xf32>
    %15 = vector.multi_reduction <maximumf>, %13, %cst_17 [1] : vector<8x8xf32> to vector<8xf32>
    %16 = vector.shape_cast %15 : vector<8xf32> to vector<8x1xf32>
    %17 = arith.maximumf %14, %16 : vector<8x1xf32>
    %18 = arith.subf %14, %17 : vector<8x1xf32>
    %19 = math.exp %18 : vector<8x1xf32>
    %20 = vector.broadcast %17 : vector<8x1xf32> to vector<8x8xf32>
    %21 = arith.subf %13, %20 : vector<8x8xf32>
    %22 = math.exp %21 : vector<8x8xf32>
    %c0_18 = arith.constant 0 : index
    %c0_19 = arith.constant 0 : index
    %23 = vector.load %arg10[%c0_18, %c0_19] : memref<8x1xf32, #tpu.memory_space<vmem>>, vector<8x1xf32>
    %24 = arith.mulf %19, %23 : vector<8x1xf32>
    %cst_20 = arith.constant dense<0.000000e+00> : vector<8xf32>
    %25 = vector.multi_reduction <add>, %22, %cst_20 [1] : vector<8x8xf32> to vector<8xf32>
    %26 = vector.shape_cast %25 : vector<8xf32> to vector<8x1xf32>
    %27 = arith.addf %24, %26 : vector<8x1xf32>
    %c0_21 = arith.constant 0 : index
    %c0_22 = arith.constant 0 : index
    %28 = vector.load %arg10[%c0_21, %c0_22] : memref<8x1xf32, #tpu.memory_space<vmem>>, vector<8x1xf32>
    tpu.vector_store %arg10[%c0_21, %c0_22], %27 {strides = array<i32>} : memref<8x1xf32, #tpu.memory_space<vmem>>, vector<8x1xf32>,
    %c0_23 = arith.constant 0 : index
    %c0_24 = arith.constant 0 : index
    %29 = vector.load %arg11[%c0_23, %c0_24] : memref<8x8xf32, #tpu.memory_space<vmem>>, vector<8x8xf32>
    %30 = vector.broadcast %19 : vector<8x1xf32> to vector<8x8xf32>
    %31 = arith.mulf %30, %29 : vector<8x8xf32>
    %32 = arith.truncf %22 : vector<8x8xf32> to vector<8x8xbf16>
    %cst_25 = arith.constant dense<0.000000e+00> : vector<8x8xf32>
    %33 = tpu.matmul %32, %8, %cst_25 {dimension_numbers = #tpu.dot_dimension_numbers<[1], [0], [0], [1], [0, 0, 1, 1], [], []>} : vector<8x8xbf16>, vector<8x8xbf16>, vector<8x8xf32> -> vector<8x8xf32>
    %34 = arith.addf %31, %33 : vector<8x8xf32>
    %c0_26 = arith.constant 0 : index
    %c0_27 = arith.constant 0 : index
    %35 = vector.load %arg11[%c0_26, %c0_27] : memref<8x8xf32, #tpu.memory_space<vmem>>, vector<8x8xf32>
    tpu.vector_store %arg11[%c0_26, %c0_27], %34 {strides = array<i32>} : memref<8x8xf32, #tpu.memory_space<vmem>>, vector<8x8xf32>,
    %c0_28 = arith.constant 0 : index
    %c0_29 = arith.constant 0 : index
    %36 = vector.load %arg9[%c0_28, %c0_29] : memref<8x1xf32, #tpu.memory_space<vmem>>, vector<8x1xf32>
    tpu.vector_store %arg9[%c0_28, %c0_29], %17 {strides = array<i32>} : memref<8x1xf32, #tpu.memory_space<vmem>>, vector<8x1xf32>,
    %c0_i32_30 = arith.constant 0 : i32
    %37 = arith.cmpi eq, %arg3, %c0_i32_30 : i32
    %38 = arith.extui %37 : i1 to i32
    %c0_i32_31 = arith.constant 0 : i32
    %39 = arith.cmpi ne, %38, %c0_i32_31 : i32
    scf.if %39 {
      %c0_32 = arith.constant 0 : index
      %c0_33 = arith.constant 0 : index
      %40 = vector.load %arg10[%c0_32, %c0_33] : memref<8x1xf32, #tpu.memory_space<vmem>>, vector<8x1xf32>
      %41 = tpu.reciprocal %40 {approx = true} : vector<8x1xf32> -> vector<8x1xf32>
      %c0_34 = arith.constant 0 : index
      %c0_35 = arith.constant 0 : index
      %42 = vector.load %arg11[%c0_34, %c0_35] : memref<8x8xf32, #tpu.memory_space<vmem>>, vector<8x8xf32>
      %43 = vector.broadcast %41 : vector<8x1xf32> to vector<8x8xf32>
      %44 = arith.mulf %42, %43 : vector<8x8xf32>
      %45 = arith.truncf %44 : vector<8x8xf32> to vector<8x8xbf16>
      %c0_36 = arith.constant 0 : index
      %c0_37 = arith.constant 0 : index
      %c0_38 = arith.constant 0 : index
      %c0_39 = arith.constant 0 : index
      %46 = vector.load %arg8[%c0_36, %c0_37, %c0_38, %c0_39] : memref<1x1x8x8xbf16, #tpu.memory_space<vmem>>, vector<1x1x8x8xbf16>
      %47 = vector.shape_cast %46 : vector<1x1x8x8xbf16> to vector<8x8xbf16>
      %48 = vector.shape_cast %45 : vector<8x8xbf16> to vector<1x1x8x8xbf16>
      tpu.vector_store %arg8[%c0_36, %c0_37, %c0_38, %c0_39], %48 {strides = array<i32>} : memref<1x1x8x8xbf16, #tpu.memory_space<vmem>>, vector<1x1x8x8xbf16>,
    } else {
    }
    return
  }
  func.func @transform_0(%arg0: i32, %arg1: i32, %arg2: i32, %arg3: i32) -> (i32, i32, i32, i32) {
    %c0_i32 = arith.constant 0 : i32
    %c0_i32_0 = arith.constant 0 : i32
    return %arg0, %arg1, %arg2, %c0_i32 : i32, i32, i32, i32
  }
  func.func @transform_1(%arg0: i32, %arg1: i32, %arg2: i32, %arg3: i32) -> (i32, i32, i32, i32) {
    %c0_i32 = arith.constant 0 : i32
    %c0_i32_0 = arith.constant 0 : i32
    return %arg0, %arg1, %arg3, %c0_i32 : i32, i32, i32, i32
  }
  func.func @transform_2(%arg0: i32, %arg1: i32, %arg2: i32, %arg3: i32) -> (i32, i32, i32, i32) {
    %c0_i32 = arith.constant 0 : i32
    %c0_i32_0 = arith.constant 0 : i32
    return %arg0, %arg1, %arg3, %c0_i32 : i32, i32, i32, i32
  }
  func.func @transform_3(%arg0: i32, %arg1: i32, %arg2: i32, %arg3: i32) -> (i32, i32, i32) {
    %c0_i32 = arith.constant 0 : i32
    %c0_i32_0 = arith.constant 0 : i32
    return %arg0, %c0_i32, %arg3 : i32, i32, i32
  }
  func.func @transform_4(%arg0: i32, %arg1: i32, %arg2: i32, %arg3: i32) -> (i32, i32, i32, i32) {
    %c0_i32 = arith.constant 0 : i32
    %c0_i32_0 = arith.constant 0 : i32
    return %arg0, %arg1, %arg2, %c0_i32 : i32, i32, i32, i32
  }
}

module attributes {stable_mosaic.version = 11 : i64} {
  func.func @_linear_res_ln_kernel(%arg0: i32, %arg1: i32, %arg2: memref<8x128xbf16, #tpu.memory_space<vmem>>, %arg3: memref<128x32xbf16, #tpu.memory_space<vmem>>, %arg4: memref<1x32xf32, #tpu.memory_space<vmem>>, %arg5: memref<8x32xbf16, #tpu.memory_space<vmem>>, %arg6: memref<1x32xf32, #tpu.memory_space<vmem>>, %arg7: memref<1x32xf32, #tpu.memory_space<vmem>>, %arg8: memref<8x32xbf16, #tpu.memory_space<vmem>>, %arg9: memref<8x32xf32, #tpu.memory_space<vmem>>) attributes {dimension_semantics = [#tpu.dimension_semantics<parallel>, #tpu.dimension_semantics<arbitrary>], iteration_bounds = array<i64: 2, 1>, scalar_prefetch = 0 : i64, scratch_operands = 1 : i64, tpu.core_type = #tpu.core_type<tc>, window_params = [{transform_indices = @transform_0, window_bounds = array<i64: 8, 128>}, {transform_indices = @transform_1, window_bounds = array<i64: 128, 32>}, {pipeline_mode = #tpu.pipeline_mode<synchronous>, transform_indices = @transform_2, window_bounds = array<i64: 1, 32>}, {transform_indices = @transform_3, window_bounds = array<i64: 8, 32>}, {pipeline_mode = #tpu.pipeline_mode<synchronous>, transform_indices = @transform_4, window_bounds = array<i64: 1, 32>}, {pipeline_mode = #tpu.pipeline_mode<synchronous>, transform_indices = @transform_5, window_bounds = array<i64: 1, 32>}, {transform_indices = @transform_6, window_bounds = array<i64: 8, 32>}]} {
    %c0_i32 = arith.constant 0 : i32
    %0 = arith.cmpi eq, %arg1, %c0_i32 : i32
    %1 = arith.extui %0 : i1 to i32
    %c0_i32_0 = arith.constant 0 : i32
    %2 = arith.cmpi ne, %1, %c0_i32_0 : i32
    scf.if %2 {
      %cst_10 = arith.constant 0.000000e+00 : f32
      %12 = vector.broadcast %cst_10 : f32 to vector<8x32xf32>
      %c0_11 = arith.constant 0 : index
      %c0_12 = arith.constant 0 : index
      %13 = vector.load %arg9[%c0_11, %c0_12] : memref<8x32xf32, #tpu.memory_space<vmem>>, vector<8x32xf32>
      tpu.vector_store %arg9[%c0_11, %c0_12], %12 {strides = array<i32>} : memref<8x32xf32, #tpu.memory_space<vmem>>, vector<8x32xf32>,
    } else {
    }
    %c0 = arith.constant 0 : index
    %c0_1 = arith.constant 0 : index
    %3 = vector.load %arg9[%c0, %c0_1] : memref<8x32xf32, #tpu.memory_space<vmem>>, vector<8x32xf32>
    %c0_2 = arith.constant 0 : index
    %c0_3 = arith.constant 0 : index
    %4 = vector.load %arg2[%c0_2, %c0_3] : memref<8x128xbf16, #tpu.memory_space<vmem>>, vector<8x128xbf16>
    %c0_4 = arith.constant 0 : index
    %c0_5 = arith.constant 0 : index
    %5 = vector.load %arg3[%c0_4, %c0_5] : memref<128x32xbf16, #tpu.memory_space<vmem>>, vector<128x32xbf16>
    %cst = arith.constant dense<0.000000e+00> : vector<8x32xf32>
    %6 = tpu.matmul %4, %5, %cst {dimension_numbers = #tpu.dot_dimension_numbers<[1], [0], [0], [1], [0, 0, 1, 1], [], []>} : vector<8x128xbf16>, vector<128x32xbf16>, vector<8x32xf32> -> vector<8x32xf32>
    %7 = arith.addf %3, %6 : vector<8x32xf32>
    %c0_6 = arith.constant 0 : index
    %c0_7 = arith.constant 0 : index
    %8 = vector.load %arg9[%c0_6, %c0_7] : memref<8x32xf32, #tpu.memory_space<vmem>>, vector<8x32xf32>
    tpu.vector_store %arg9[%c0_6, %c0_7], %7 {strides = array<i32>} : memref<8x32xf32, #tpu.memory_space<vmem>>, vector<8x32xf32>,
    %c0_i32_8 = arith.constant 0 : i32
    %9 = arith.cmpi eq, %arg1, %c0_i32_8 : i32
    %10 = arith.extui %9 : i1 to i32
    %c0_i32_9 = arith.constant 0 : i32
    %11 = arith.cmpi ne, %10, %c0_i32_9 : i32
    scf.if %11 {
      %c0_10 = arith.constant 0 : index
      %c0_11 = arith.constant 0 : index
      %12 = vector.load %arg9[%c0_10, %c0_11] : memref<8x32xf32, #tpu.memory_space<vmem>>, vector<8x32xf32>
      %c0_12 = arith.constant 0 : index
      %c0_13 = arith.constant 0 : index
      %13 = vector.load %arg4[%c0_12, %c0_13] : memref<1x32xf32, #tpu.memory_space<vmem>>, vector<1x32xf32>
      %14 = vector.broadcast %13 : vector<1x32xf32> to vector<8x32xf32>
      %15 = arith.addf %12, %14 : vector<8x32xf32>
      %c0_14 = arith.constant 0 : index
      %c0_15 = arith.constant 0 : index
      %16 = vector.load %arg5[%c0_14, %c0_15] : memref<8x32xbf16, #tpu.memory_space<vmem>>, vector<8x32xbf16>
      %17 = arith.extf %16 : vector<8x32xbf16> to vector<8x32xf32>
      %18 = arith.addf %15, %17 : vector<8x32xf32>
      %cst_16 = arith.constant dense<0.000000e+00> : vector<8xf32>
      %19 = vector.multi_reduction <add>, %18, %cst_16 [1] : vector<8x32xf32> to vector<8xf32>
      %20 = vector.shape_cast %19 : vector<8xf32> to vector<8x1xf32>
      %cst_17 = arith.constant 3.200000e+01 : f32
      %21 = vector.broadcast %cst_17 : f32 to vector<8x1xf32>
      %22 = arith.divf %20, %21 : vector<8x1xf32>
      %23 = vector.broadcast %22 : vector<8x1xf32> to vector<8x32xf32>
      %24 = arith.subf %18, %23 : vector<8x32xf32>
      %25 = arith.mulf %24, %24 : vector<8x32xf32>
      %cst_18 = arith.constant dense<0.000000e+00> : vector<8xf32>
      %26 = vector.multi_reduction <add>, %25, %cst_18 [1] : vector<8x32xf32> to vector<8xf32>
      %27 = vector.shape_cast %26 : vector<8xf32> to vector<8x1xf32>
      %cst_19 = arith.constant 3.200000e+01 : f32
      %28 = vector.broadcast %cst_19 : f32 to vector<8x1xf32>
      %29 = arith.divf %27, %28 : vector<8x1xf32>
      %30 = vector.broadcast %22 : vector<8x1xf32> to vector<8x32xf32>
      %31 = arith.subf %18, %30 : vector<8x32xf32>
      %cst_20 = arith.constant 9.99999974E-6 : f32
      %32 = vector.broadcast %cst_20 : f32 to vector<8x1xf32>
      %33 = arith.addf %29, %32 : vector<8x1xf32>
      %34 = math.rsqrt %33 : vector<8x1xf32>
      %35 = vector.broadcast %34 : vector<8x1xf32> to vector<8x32xf32>
      %36 = arith.mulf %31, %35 : vector<8x32xf32>
      %c0_21 = arith.constant 0 : index
      %c0_22 = arith.constant 0 : index
      %37 = vector.load %arg6[%c0_21, %c0_22] : memref<1x32xf32, #tpu.memory_space<vmem>>, vector<1x32xf32>
      %38 = vector.broadcast %37 : vector<1x32xf32> to vector<8x32xf32>
      %39 = arith.mulf %36, %38 : vector<8x32xf32>
      %c0_23 = arith.constant 0 : index
      %c0_24 = arith.constant 0 : index
      %40 = vector.load %arg7[%c0_23, %c0_24] : memref<1x32xf32, #tpu.memory_space<vmem>>, vector<1x32xf32>
      %41 = vector.broadcast %40 : vector<1x32xf32> to vector<8x32xf32>
      %42 = arith.addf %39, %41 : vector<8x32xf32>
      %43 = arith.truncf %42 : vector<8x32xf32> to vector<8x32xbf16>
      %c0_25 = arith.constant 0 : index
      %c0_26 = arith.constant 0 : index
      %44 = vector.load %arg8[%c0_25, %c0_26] : memref<8x32xbf16, #tpu.memory_space<vmem>>, vector<8x32xbf16>
      tpu.vector_store %arg8[%c0_25, %c0_26], %43 {strides = array<i32>} : memref<8x32xbf16, #tpu.memory_space<vmem>>, vector<8x32xbf16>,
    } else {
    }
    return
  }
  func.func @transform_0(%arg0: i32, %arg1: i32) -> (i32, i32) {
    %c0_i32 = arith.constant 0 : i32
    return %arg0, %arg1 : i32, i32
  }
  func.func @transform_1(%arg0: i32, %arg1: i32) -> (i32, i32) {
    %c0_i32 = arith.constant 0 : i32
    %c0_i32_0 = arith.constant 0 : i32
    return %arg1, %c0_i32 : i32, i32
  }
  func.func @transform_2(%arg0: i32, %arg1: i32) -> (i32, i32) {
    %c0_i32 = arith.constant 0 : i32
    %c0_i32_0 = arith.constant 0 : i32
    %c0_i32_1 = arith.constant 0 : i32
    return %c0_i32, %c0_i32_0 : i32, i32
  }
  func.func @transform_3(%arg0: i32, %arg1: i32) -> (i32, i32) {
    %c0_i32 = arith.constant 0 : i32
    %c0_i32_0 = arith.constant 0 : i32
    return %arg0, %c0_i32 : i32, i32
  }
  func.func @transform_4(%arg0: i32, %arg1: i32) -> (i32, i32) {
    %c0_i32 = arith.constant 0 : i32
    %c0_i32_0 = arith.constant 0 : i32
    %c0_i32_1 = arith.constant 0 : i32
    return %c0_i32, %c0_i32_0 : i32, i32
  }
  func.func @transform_5(%arg0: i32, %arg1: i32) -> (i32, i32) {
    %c0_i32 = arith.constant 0 : i32
    %c0_i32_0 = arith.constant 0 : i32
    %c0_i32_1 = arith.constant 0 : i32
    return %c0_i32, %c0_i32_0 : i32, i32
  }
  func.func @transform_6(%arg0: i32, %arg1: i32) -> (i32, i32) {
    %c0_i32 = arith.constant 0 : i32
    %c0_i32_0 = arith.constant 0 : i32
    return %arg0, %c0_i32 : i32, i32
  }
}

module attributes {stable_mosaic.version = 11 : i64} {
  func.func @_linear_kernel(%arg0: i32, %arg1: i32, %arg2: i32, %arg3: memref<8x128xbf16, #tpu.memory_space<vmem>>, %arg4: memref<128x128xbf16, #tpu.memory_space<vmem>>, %arg5: memref<1x128xf32, #tpu.memory_space<vmem>>, %arg6: memref<8x128xbf16, #tpu.memory_space<vmem>>, %arg7: memref<8x128xf32, #tpu.memory_space<vmem>>) attributes {dimension_semantics = [#tpu.dimension_semantics<parallel>, #tpu.dimension_semantics<parallel>, #tpu.dimension_semantics<arbitrary>], iteration_bounds = array<i64: 2, 1, 1>, scalar_prefetch = 0 : i64, scratch_operands = 1 : i64, tpu.core_type = #tpu.core_type<tc>, window_params = [{transform_indices = @transform_0, window_bounds = array<i64: 8, 128>}, {transform_indices = @transform_1, window_bounds = array<i64: 128, 128>}, {transform_indices = @transform_2, window_bounds = array<i64: 1, 128>}, {transform_indices = @transform_3, window_bounds = array<i64: 8, 128>}]} {
    %c0_i32 = arith.constant 0 : i32
    %0 = arith.cmpi eq, %arg2, %c0_i32 : i32
    %1 = arith.extui %0 : i1 to i32
    %c0_i32_0 = arith.constant 0 : i32
    %2 = arith.cmpi ne, %1, %c0_i32_0 : i32
    scf.if %2 {
      %cst_10 = arith.constant 0.000000e+00 : f32
      %12 = vector.broadcast %cst_10 : f32 to vector<8x128xf32>
      %c0_11 = arith.constant 0 : index
      %c0_12 = arith.constant 0 : index
      %13 = vector.load %arg7[%c0_11, %c0_12] : memref<8x128xf32, #tpu.memory_space<vmem>>, vector<8x128xf32>
      tpu.vector_store %arg7[%c0_11, %c0_12], %12 {strides = array<i32>} : memref<8x128xf32, #tpu.memory_space<vmem>>, vector<8x128xf32>,
    } else {
    }
    %c0 = arith.constant 0 : index
    %c0_1 = arith.constant 0 : index
    %3 = vector.load %arg7[%c0, %c0_1] : memref<8x128xf32, #tpu.memory_space<vmem>>, vector<8x128xf32>
    %c0_2 = arith.constant 0 : index
    %c0_3 = arith.constant 0 : index
    %4 = vector.load %arg3[%c0_2, %c0_3] : memref<8x128xbf16, #tpu.memory_space<vmem>>, vector<8x128xbf16>
    %c0_4 = arith.constant 0 : index
    %c0_5 = arith.constant 0 : index
    %5 = vector.load %arg4[%c0_4, %c0_5] : memref<128x128xbf16, #tpu.memory_space<vmem>>, vector<128x128xbf16>
    %cst = arith.constant dense<0.000000e+00> : vector<8x128xf32>
    %6 = tpu.matmul %4, %5, %cst {dimension_numbers = #tpu.dot_dimension_numbers<[1], [0], [0], [1], [0, 0, 1, 1], [], []>} : vector<8x128xbf16>, vector<128x128xbf16>, vector<8x128xf32> -> vector<8x128xf32>
    %7 = arith.addf %3, %6 : vector<8x128xf32>
    %c0_6 = arith.constant 0 : index
    %c0_7 = arith.constant 0 : index
    %8 = vector.load %arg7[%c0_6, %c0_7] : memref<8x128xf32, #tpu.memory_space<vmem>>, vector<8x128xf32>
    tpu.vector_store %arg7[%c0_6, %c0_7], %7 {strides = array<i32>} : memref<8x128xf32, #tpu.memory_space<vmem>>, vector<8x128xf32>,
    %c0_i32_8 = arith.constant 0 : i32
    %9 = arith.cmpi eq, %arg2, %c0_i32_8 : i32
    %10 = arith.extui %9 : i1 to i32
    %c0_i32_9 = arith.constant 0 : i32
    %11 = arith.cmpi ne, %10, %c0_i32_9 : i32
    scf.if %11 {
      %c0_10 = arith.constant 0 : index
      %c0_11 = arith.constant 0 : index
      %12 = vector.load %arg7[%c0_10, %c0_11] : memref<8x128xf32, #tpu.memory_space<vmem>>, vector<8x128xf32>
      %c0_12 = arith.constant 0 : index
      %c0_13 = arith.constant 0 : index
      %13 = vector.load %arg5[%c0_12, %c0_13] : memref<1x128xf32, #tpu.memory_space<vmem>>, vector<1x128xf32>
      %14 = vector.broadcast %13 : vector<1x128xf32> to vector<8x128xf32>
      %15 = arith.addf %12, %14 : vector<8x128xf32>
      %cst_14 = arith.constant 0.000000e+00 : f32
      %16 = vector.broadcast %cst_14 : f32 to vector<8x128xf32>
      %17 = arith.maximumf %15, %16 : vector<8x128xf32>
      %18 = arith.truncf %17 : vector<8x128xf32> to vector<8x128xbf16>
      %c0_15 = arith.constant 0 : index
      %c0_16 = arith.constant 0 : index
      %19 = vector.load %arg6[%c0_15, %c0_16] : memref<8x128xbf16, #tpu.memory_space<vmem>>, vector<8x128xbf16>
      tpu.vector_store %arg6[%c0_15, %c0_16], %18 {strides = array<i32>} : memref<8x128xbf16, #tpu.memory_space<vmem>>, vector<8x128xbf16>,
    } else {
    }
    return
  }
  func.func @transform_0(%arg0: i32, %arg1: i32, %arg2: i32) -> (i32, i32) {
    %c0_i32 = arith.constant 0 : i32
    return %arg0, %arg2 : i32, i32
  }
  func.func @transform_1(%arg0: i32, %arg1: i32, %arg2: i32) -> (i32, i32) {
    %c0_i32 = arith.constant 0 : i32
    return %arg2, %arg1 : i32, i32
  }
  func.func @transform_2(%arg0: i32, %arg1: i32, %arg2: i32) -> (i32, i32) {
    %c0_i32 = arith.constant 0 : i32
    %c0_i32_0 = arith.constant 0 : i32
    return %c0_i32, %arg1 : i32, i32
  }
  func.func @transform_3(%arg0: i32, %arg1: i32, %arg2: i32) -> (i32, i32) {
    %c0_i32 = arith.constant 0 : i32
    return %arg0, %arg1 : i32, i32
  }
}

module attributes {stable_mosaic.version = 11 : i64} {
  func.func @_ln_kernel(%arg0: i32, %arg1: memref<8x32xbf16, #tpu.memory_space<vmem>>, %arg2: memref<1x32xf32, #tpu.memory_space<vmem>>, %arg3: memref<1x32xf32, #tpu.memory_space<vmem>>, %arg4: memref<8x32xbf16, #tpu.memory_space<vmem>>) attributes {dimension_semantics = [#tpu.dimension_semantics<parallel>], iteration_bounds = array<i64: 2>, scalar_prefetch = 0 : i64, scratch_operands = 0 : i64, tpu.core_type = #tpu.core_type<tc>, window_params = [{transform_indices = @transform_0, window_bounds = array<i64: 8, 32>}, {pipeline_mode = #tpu.pipeline_mode<synchronous>, transform_indices = @transform_1, window_bounds = array<i64: 1, 32>}, {pipeline_mode = #tpu.pipeline_mode<synchronous>, transform_indices = @transform_2, window_bounds = array<i64: 1, 32>}, {transform_indices = @transform_3, window_bounds = array<i64: 8, 32>}]} {
    %c0 = arith.constant 0 : index
    %c0_0 = arith.constant 0 : index
    %0 = vector.load %arg1[%c0, %c0_0] : memref<8x32xbf16, #tpu.memory_space<vmem>>, vector<8x32xbf16>
    %1 = arith.extf %0 : vector<8x32xbf16> to vector<8x32xf32>
    %cst = arith.constant dense<0.000000e+00> : vector<8xf32>
    %2 = vector.multi_reduction <add>, %1, %cst [1] : vector<8x32xf32> to vector<8xf32>
    %3 = vector.shape_cast %2 : vector<8xf32> to vector<8x1xf32>
    %cst_1 = arith.constant 3.200000e+01 : f32
    %4 = vector.broadcast %cst_1 : f32 to vector<8x1xf32>
    %5 = arith.divf %3, %4 : vector<8x1xf32>
    %6 = vector.broadcast %5 : vector<8x1xf32> to vector<8x32xf32>
    %7 = arith.subf %1, %6 : vector<8x32xf32>
    %8 = arith.mulf %7, %7 : vector<8x32xf32>
    %cst_2 = arith.constant dense<0.000000e+00> : vector<8xf32>
    %9 = vector.multi_reduction <add>, %8, %cst_2 [1] : vector<8x32xf32> to vector<8xf32>
    %10 = vector.shape_cast %9 : vector<8xf32> to vector<8x1xf32>
    %cst_3 = arith.constant 3.200000e+01 : f32
    %11 = vector.broadcast %cst_3 : f32 to vector<8x1xf32>
    %12 = arith.divf %10, %11 : vector<8x1xf32>
    %13 = vector.broadcast %5 : vector<8x1xf32> to vector<8x32xf32>
    %14 = arith.subf %1, %13 : vector<8x32xf32>
    %cst_4 = arith.constant 9.99999974E-6 : f32
    %15 = vector.broadcast %cst_4 : f32 to vector<8x1xf32>
    %16 = arith.addf %12, %15 : vector<8x1xf32>
    %17 = math.rsqrt %16 : vector<8x1xf32>
    %18 = vector.broadcast %17 : vector<8x1xf32> to vector<8x32xf32>
    %19 = arith.mulf %14, %18 : vector<8x32xf32>
    %c0_5 = arith.constant 0 : index
    %c0_6 = arith.constant 0 : index
    %20 = vector.load %arg2[%c0_5, %c0_6] : memref<1x32xf32, #tpu.memory_space<vmem>>, vector<1x32xf32>
    %21 = vector.broadcast %20 : vector<1x32xf32> to vector<8x32xf32>
    %22 = arith.mulf %19, %21 : vector<8x32xf32>
    %c0_7 = arith.constant 0 : index
    %c0_8 = arith.constant 0 : index
    %23 = vector.load %arg3[%c0_7, %c0_8] : memref<1x32xf32, #tpu.memory_space<vmem>>, vector<1x32xf32>
    %24 = vector.broadcast %23 : vector<1x32xf32> to vector<8x32xf32>
    %25 = arith.addf %22, %24 : vector<8x32xf32>
    %26 = arith.truncf %25 : vector<8x32xf32> to vector<8x32xbf16>
    %c0_9 = arith.constant 0 : index
    %c0_10 = arith.constant 0 : index
    %27 = vector.load %arg4[%c0_9, %c0_10] : memref<8x32xbf16, #tpu.memory_space<vmem>>, vector<8x32xbf16>
    tpu.vector_store %arg4[%c0_9, %c0_10], %26 {strides = array<i32>} : memref<8x32xbf16, #tpu.memory_space<vmem>>, vector<8x32xbf16>,
    return
  }
  func.func @transform_0(%arg0: i32) -> (i32, i32) {
    %c0_i32 = arith.constant 0 : i32
    %c0_i32_0 = arith.constant 0 : i32
    return %arg0, %c0_i32 : i32, i32
  }
  func.func @transform_1(%arg0: i32) -> (i32, i32) {
    %c0_i32 = arith.constant 0 : i32
    %c0_i32_0 = arith.constant 0 : i32
    %c0_i32_1 = arith.constant 0 : i32
    return %c0_i32, %c0_i32_0 : i32, i32
  }
  func.func @transform_2(%arg0: i32) -> (i32, i32) {
    %c0_i32 = arith.constant 0 : i32
    %c0_i32_0 = arith.constant 0 : i32
    %c0_i32_1 = arith.constant 0 : i32
    return %c0_i32, %c0_i32_0 : i32, i32
  }
  func.func @transform_3(%arg0: i32) -> (i32, i32) {
    %c0_i32 = arith.constant 0 : i32
    %c0_i32_0 = arith.constant 0 : i32
    return %arg0, %c0_i32 : i32, i32
  }
}

module attributes {stable_mosaic.version = 11 : i64} {
  func.func @_linear_kernel(%arg0: i32, %arg1: i32, %arg2: i32, %arg3: memref<8x128xbf16, #tpu.memory_space<vmem>>, %arg4: memref<128x128xbf16, #tpu.memory_space<vmem>>, %arg5: memref<1x128xf32, #tpu.memory_space<vmem>>, %arg6: memref<8x128xf32, #tpu.memory_space<vmem>>, %arg7: memref<8x128xf32, #tpu.memory_space<vmem>>) attributes {dimension_semantics = [#tpu.dimension_semantics<parallel>, #tpu.dimension_semantics<parallel>, #tpu.dimension_semantics<arbitrary>], iteration_bounds = array<i64: 2, 1, 1>, scalar_prefetch = 0 : i64, scratch_operands = 1 : i64, tpu.core_type = #tpu.core_type<tc>, window_params = [{transform_indices = @transform_0, window_bounds = array<i64: 8, 128>}, {transform_indices = @transform_1, window_bounds = array<i64: 128, 128>}, {transform_indices = @transform_2, window_bounds = array<i64: 1, 128>}, {transform_indices = @transform_3, window_bounds = array<i64: 8, 128>}]} {
    %c0_i32 = arith.constant 0 : i32
    %0 = arith.cmpi eq, %arg2, %c0_i32 : i32
    %1 = arith.extui %0 : i1 to i32
    %c0_i32_0 = arith.constant 0 : i32
    %2 = arith.cmpi ne, %1, %c0_i32_0 : i32
    scf.if %2 {
      %cst_10 = arith.constant 0.000000e+00 : f32
      %12 = vector.broadcast %cst_10 : f32 to vector<8x128xf32>
      %c0_11 = arith.constant 0 : index
      %c0_12 = arith.constant 0 : index
      %13 = vector.load %arg7[%c0_11, %c0_12] : memref<8x128xf32, #tpu.memory_space<vmem>>, vector<8x128xf32>
      tpu.vector_store %arg7[%c0_11, %c0_12], %12 {strides = array<i32>} : memref<8x128xf32, #tpu.memory_space<vmem>>, vector<8x128xf32>,
    } else {
    }
    %c0 = arith.constant 0 : index
    %c0_1 = arith.constant 0 : index
    %3 = vector.load %arg7[%c0, %c0_1] : memref<8x128xf32, #tpu.memory_space<vmem>>, vector<8x128xf32>
    %c0_2 = arith.constant 0 : index
    %c0_3 = arith.constant 0 : index
    %4 = vector.load %arg3[%c0_2, %c0_3] : memref<8x128xbf16, #tpu.memory_space<vmem>>, vector<8x128xbf16>
    %c0_4 = arith.constant 0 : index
    %c0_5 = arith.constant 0 : index
    %5 = vector.load %arg4[%c0_4, %c0_5] : memref<128x128xbf16, #tpu.memory_space<vmem>>, vector<128x128xbf16>
    %cst = arith.constant dense<0.000000e+00> : vector<8x128xf32>
    %6 = tpu.matmul %4, %5, %cst {dimension_numbers = #tpu.dot_dimension_numbers<[1], [0], [0], [1], [0, 0, 1, 1], [], []>} : vector<8x128xbf16>, vector<128x128xbf16>, vector<8x128xf32> -> vector<8x128xf32>
    %7 = arith.addf %3, %6 : vector<8x128xf32>
    %c0_6 = arith.constant 0 : index
    %c0_7 = arith.constant 0 : index
    %8 = vector.load %arg7[%c0_6, %c0_7] : memref<8x128xf32, #tpu.memory_space<vmem>>, vector<8x128xf32>
    tpu.vector_store %arg7[%c0_6, %c0_7], %7 {strides = array<i32>} : memref<8x128xf32, #tpu.memory_space<vmem>>, vector<8x128xf32>,
    %c0_i32_8 = arith.constant 0 : i32
    %9 = arith.cmpi eq, %arg2, %c0_i32_8 : i32
    %10 = arith.extui %9 : i1 to i32
    %c0_i32_9 = arith.constant 0 : i32
    %11 = arith.cmpi ne, %10, %c0_i32_9 : i32
    scf.if %11 {
      %c0_10 = arith.constant 0 : index
      %c0_11 = arith.constant 0 : index
      %12 = vector.load %arg7[%c0_10, %c0_11] : memref<8x128xf32, #tpu.memory_space<vmem>>, vector<8x128xf32>
      %c0_12 = arith.constant 0 : index
      %c0_13 = arith.constant 0 : index
      %13 = vector.load %arg5[%c0_12, %c0_13] : memref<1x128xf32, #tpu.memory_space<vmem>>, vector<1x128xf32>
      %14 = vector.broadcast %13 : vector<1x128xf32> to vector<8x128xf32>
      %15 = arith.addf %12, %14 : vector<8x128xf32>
      %c0_14 = arith.constant 0 : index
      %c0_15 = arith.constant 0 : index
      %16 = vector.load %arg6[%c0_14, %c0_15] : memref<8x128xf32, #tpu.memory_space<vmem>>, vector<8x128xf32>
      tpu.vector_store %arg6[%c0_14, %c0_15], %15 {strides = array<i32>} : memref<8x128xf32, #tpu.memory_space<vmem>>, vector<8x128xf32>,
    } else {
    }
    return
  }
  func.func @transform_0(%arg0: i32, %arg1: i32, %arg2: i32) -> (i32, i32) {
    %c0_i32 = arith.constant 0 : i32
    return %arg0, %arg2 : i32, i32
  }
  func.func @transform_1(%arg0: i32, %arg1: i32, %arg2: i32) -> (i32, i32) {
    %c0_i32 = arith.constant 0 : i32
    return %arg2, %arg1 : i32, i32
  }
  func.func @transform_2(%arg0: i32, %arg1: i32, %arg2: i32) -> (i32, i32) {
    %c0_i32 = arith.constant 0 : i32
    %c0_i32_0 = arith.constant 0 : i32
    return %c0_i32, %arg1 : i32, i32
  }
  func.func @transform_3(%arg0: i32, %arg1: i32, %arg2: i32) -> (i32, i32) {
    %c0_i32 = arith.constant 0 : i32
    return %arg0, %arg1 : i32, i32
  }
}

</mosaic_0001>

<bundles_post_ra>
// kernel: self_attn_net_forward.13
= control target key start
LH: loop header
LB: loop body
LE: loop exit
PB: predicated region body
PF: predicated region fallthrough
CT: control target
= control target key end

     0   :  { %s684_s15 = smov 0   ;;  %s686_s16 = smov 0   ;;  %s751_s0 = inlined_call_operand.vmem [shape: bf16[16,128], index: 0, kind: input, shape index: {}]   ;;  %s752_s1 = inlined_call_operand.vmem [shape: bf16[128,128], index: 1, kind: input, shape index: {}]   ;;  %s753_s2 = inlined_call_operand.vmem [shape: f32[1,128], index: 2, kind: input, shape index: {}]   ;;  %s754_s3 = inlined_call_operand.vmem [shape: bf16[8,128], index: 3, kind: input, shape index: {}]   ;;  %s755_s4 = inlined_call_operand.vmem [shape: bf16[16,128], index: 4, kind: output, shape index: {}]  }
   0x1   :  { %s688_s17 = smov 0  }
   0x2 LB: > { %s33_s18 = sadd.s32 1, %s651_s16  ;;  %p556_p0 = scmp.ge.s32.totalorder %s655_s17, 1  ;;  %s655_s17 = sphi %s688_s17, %s14_s17   ;;  %s651_s16 = sphi %s686_s16, %s757_s16   ;;  %s647_s15 = sphi %s684_s15, %s756_s15  }
   0x3   : > { %p35_p1 = scmp.ge.s32.totalorder %s33_s18, 2  ;;  %p220_p2 = scmp.lt.s32.totalorder %s655_s17, 3 }
   0x5   : > { %s759_s18 = smov (%p35_p1, %s33_s18), 0  ;;  %p221_p3 = pnand %p556_p0, %p220_p2 }
   0x6   : > { %v625_v0 = vld [vmem:[%s752_s1] sm:$0xff] (!%p221_p3)   ;;  %v657_v1 = vmov (!%p221_p3), 0.0   ;;  %v626_v2 = vld [vmem:[%s752_s1 + $0x8] sm:$0xff] (!%p221_p3)   ;;  %vm658_vm0 = vmmov (!%p221_p3), 0   ;;  %v627_v3 = vld [vmem:[%s752_s1 + $0x10] sm:$0xff] (!%p221_p3)   ;;  %p265_p4 = scmp.lt.s32.totalorder (!%p221_p3), %s647_s15, 1 }
   0x7   : > { %224 = sbr.rel (%p221_p3) target bundleno = 258 (0x102), region = 36  ;;  %579 = vmatprep.subr.bf16.mxu0 (!%p221_p3), %v657_v1  ;;  %595 = vmatprep.mubr.msk.bf16.mxu0 (!%p221_p3), %vm658_vm0, %v657_v1  ;;  %v628_v4 = vld [vmem:[%s752_s1 + $0x18] sm:$0xff] (!%p221_p3)   ;;  %v629_v5 = vld [vmem:[%s752_s1 + $0x20] sm:$0xff] (!%p221_p3)   ;;  %v630_v6 = vld [vmem:[%s752_s1 + $0x28] sm:$0xff] (!%p221_p3)  }
   0x8   : > { %580 = vmatpush3.bf16.msra.mxu0 (!%p221_p3), %v625_v0  ;;  %v631_v7 = vld [vmem:[%s752_s1 + $0x30] sm:$0xff] (!%p221_p3)   ;;  %v632_v8 = vld [vmem:[%s752_s1 + $0x38] sm:$0xff] (!%p221_p3)   ;;  %v421_v10 = vld [vmem:[%s754_s3] sm:$0xf] (!%p221_p3) }
   0x9   : > { %581 = vmatprep.subr.bf16.mxu0 (!%p221_p3), %v657_v1  ;;  %v567_v11 = vld [vmem:[%s753_s2] ss:$0 sm:$0xff] (!%p221_p3)  ;;  %v422_v12 = vunpack.c.l.bf16 (!%p221_p3), %v421_v10 }
   0xc   : > { %582 = vmatpush3.bf16.msra.mxu0 (!%p221_p3), %v626_v2 }
   0xd   : > { %583 = vmatprep.subr.bf16.mxu0 (!%p221_p3), %v657_v1 }
   0xe   : > { %s761_s15 = smov (!%p265_p4, %s647_s15), 1 }
   0xf   : > { %s557_s7 = sshll.u32 %s761_s15, 2 }
  0x10   : > { %584 = vmatpush3.bf16.msra.mxu0 %v627_v3  ;;  %s271_s12 = scalar_lea.vmem %s751_s0, %s557_s7  ;;  %s294_s22 = scalar_lea.vmem %s755_s4, %s557_s7 }
  0x11   : > { %585 = vmatprep.subr.bf16.mxu0 %v657_v1  ;;  %v302_v9 = vld [vmem:[%s271_s12] sm:$0xf] }
  0x14   : > { %586 = vmatpush3.bf16.msra.mxu0 %v628_v4 }
  0x15   : > { %587 = vmatprep.subr.bf16.mxu0 %v657_v1 }
  0x18   : > { %588 = vmatpush3.bf16.msra.mxu0 %v629_v5 }
  0x19   : > { %589 = vmatprep.subr.bf16.mxu0 %v657_v1 }
  0x1c   : > { %590 = vmatpush3.bf16.msra.mxu0 %v630_v6 }
  0x1d   : > { %591 = vmatprep.subr.bf16.mxu0 %v657_v1 }
  0x20   : > { %592 = vmatpush3.bf16.msra.mxu0 %v631_v7 }
  0x21   : > { %593 = vmatprep.subr.bf16.mxu0 %v657_v1 }
  0x24   : > { %594 = vmatpush3.bf16.msra.mxu0 %v632_v8 }
  0x27   : > { %596 = vmatmul.mubr.bf16.vlgmr.msra.gmra.mrb[0].mxu0 %v302_v9 }
  0xfa   : > { %v401_v13 = vpop.f32.mrb[0].mxu0 }
  0xfb   : > { %v420_v14 = vadd.f32 %v567_v11, %v401_v13  ;;  %v597_v15 = vpop.f32.mrb[1].mxu0 }
  0xfc   : > { %v404_v16 = vpop.f32.mrb[2].mxu0 }
  0xfd   : > { %v423_v17 = vadd.f32 %v422_v12, %v420_v14  ;;  %v598_v18 = vpop.f32.mrb[3].mxu0 }
  0xff   : > { %v424_v19 = vpack.c.bf16 %v423_v17, %v423_v17 }
 0x101   : > { %425 = vst [vmem:[%s294_s22] sm:$0xf] %v424_v19 }
 0x102 PF: > { %s14_s17 = sadd.s32 1, %s655_s17   ;;  %s756_s15 = smov %s651_s16 }
 0x103   : > { %p11_p5 = scmp.ge.s32.totalorder %s14_s17, 4   ;;  %s757_s16 = smov %s759_s18 }
 0x105   :  { %13 = sbr.rel (!%p11_p5) target bundleno = 2 (0x2), region = 83 }

// kernel: self_attn_net_forward.14
= control target key start
LH: loop header
LB: loop body
LE: loop exit
PB: predicated region body
PF: predicated region fallthrough
CT: control target
= control target key end

     0   :  { %s616_s12 = smov 0   ;;  %s618_s13 = smov 0   ;;  %s680_s0 = inlined_call_operand.vmem [shape: bf16[16,128], index: 0, kind: input, shape index: {}]   ;;  %s681_s1 = inlined_call_operand.vmem [shape: bf16[128,128], index: 1, kind: input, shape index: {}]   ;;  %s682_s2 = inlined_call_operand.vmem [shape: f32[1,128], index: 2, kind: input, shape index: {}]   ;;  %s683_s3 = inlined_call_operand.vmem [shape: bf16[16,128], index: 3, kind: output, shape index: {}]  }
   0x1   :  { %s620_s14 = smov 0  }
   0x2 LB: > { %s32_s15 = sadd.s32 1, %s588_s13  ;;  %p493_p0 = scmp.ge.s32.totalorder %s592_s14, 1  ;;  %s592_s14 = sphi %s620_s14, %s13_s14   ;;  %s588_s13 = sphi %s618_s13, %s685_s13   ;;  %s584_s12 = sphi %s616_s12, %s684_s12  }
   0x3   : > { %p34_p1 = scmp.ge.s32.totalorder %s32_s15, 2  ;;  %p186_p2 = scmp.lt.s32.totalorder %s592_s14, 3 }
   0x5   : > { %s687_s15 = smov (%p34_p1, %s32_s15), 0  ;;  %p187_p3 = pnand %p493_p0, %p186_p2 }
   0x6   : > { %v562_v0 = vld [vmem:[%s681_s1] sm:$0xff] (!%p187_p3)   ;;  %v594_v1 = vmov (!%p187_p3), 0.0   ;;  %v563_v2 = vld [vmem:[%s681_s1 + $0x8] sm:$0xff] (!%p187_p3)   ;;  %vm595_vm0 = vmmov (!%p187_p3), 0   ;;  %v564_v3 = vld [vmem:[%s681_s1 + $0x10] sm:$0xff] (!%p187_p3)   ;;  %p225_p4 = scmp.lt.s32.totalorder (!%p187_p3), %s584_s12, 1 }
   0x7   : > { %190 = sbr.rel (%p187_p3) target bundleno = 256 (0x100), region = 32  ;;  %516 = vmatprep.subr.bf16.mxu0 (!%p187_p3), %v594_v1  ;;  %532 = vmatprep.mubr.msk.bf16.mxu0 (!%p187_p3), %vm595_vm0, %v594_v1  ;;  %v565_v4 = vld [vmem:[%s681_s1 + $0x18] sm:$0xff] (!%p187_p3)   ;;  %v566_v5 = vld [vmem:[%s681_s1 + $0x20] sm:$0xff] (!%p187_p3)   ;;  %v567_v6 = vld [vmem:[%s681_s1 + $0x28] sm:$0xff] (!%p187_p3)  }
   0x8   : > { %517 = vmatpush3.bf16.msra.mxu0 (!%p187_p3), %v562_v0  ;;  %v568_v7 = vld [vmem:[%s681_s1 + $0x30] sm:$0xff] (!%p187_p3)   ;;  %v569_v8 = vld [vmem:[%s681_s1 + $0x38] sm:$0xff] (!%p187_p3)   ;;  %v504_v10 = vld [vmem:[%s682_s2] ss:$0 sm:$0xff] (!%p187_p3) }
   0x9   : > { %518 = vmatprep.subr.bf16.mxu0 (!%p187_p3), %v594_v1 }
   0xc   : > { %519 = vmatpush3.bf16.msra.mxu0 (!%p187_p3), %v563_v2 }
   0xd   : > { %520 = vmatprep.subr.bf16.mxu0 (!%p187_p3), %v594_v1 }
   0xe   : > { %s689_s12 = smov (!%p225_p4, %s584_s12), 1 }
   0xf   : > { %s494_s30 = sshll.u32 %s689_s12, 2 }
  0x10   : > { %521 = vmatpush3.bf16.msra.mxu0 %v564_v3  ;;  %s231_s8 = scalar_lea.vmem %s680_s0, %s494_s30  ;;  %s250_s16 = scalar_lea.vmem %s683_s3, %s494_s30 }
  0x11   : > { %522 = vmatprep.subr.bf16.mxu0 %v594_v1  ;;  %v258_v9 = vld [vmem:[%s231_s8] sm:$0xf] }
  0x14   : > { %523 = vmatpush3.bf16.msra.mxu0 %v565_v4 }
  0x15   : > { %524 = vmatprep.subr.bf16.mxu0 %v594_v1 }
  0x18   : > { %525 = vmatpush3.bf16.msra.mxu0 %v566_v5 }
  0x19   : > { %526 = vmatprep.subr.bf16.mxu0 %v594_v1 }
  0x1c   : > { %527 = vmatpush3.bf16.msra.mxu0 %v567_v6 }
  0x1d   : > { %528 = vmatprep.subr.bf16.mxu0 %v594_v1 }
  0x20   : > { %529 = vmatpush3.bf16.msra.mxu0 %v568_v7 }
  0x21   : > { %530 = vmatprep.subr.bf16.mxu0 %v594_v1 }
  0x24   : > { %531 = vmatpush3.bf16.msra.mxu0 %v569_v8 }
  0x27   : > { %533 = vmatmul.mubr.bf16.vlgmr.msra.gmra.mrb[0].mxu0 %v258_v9 }
  0xfa   : > { %v357_v11 = vpop.f32.mrb[0].mxu0 }
  0xfb   : > { %v376_v12 = vadd.f32 %v504_v10, %v357_v11  ;;  %v534_v13 = vpop.f32.mrb[1].mxu0 }
  0xfc   : > { %v360_v14 = vpop.f32.mrb[2].mxu0 }
  0xfd   : > { %v377_v15 = vpack.c.bf16 %v376_v12, %v376_v12  ;;  %v535_v16 = vpop.f32.mrb[3].mxu0 }
  0xff   : > { %378 = vst [vmem:[%s250_s16] sm:$0xf] %v377_v15 }
 0x100 PF: > { %s13_s14 = sadd.s32 1, %s592_s14   ;;  %s684_s12 = smov %s588_s13 }
 0x101   : > { %p10_p5 = scmp.ge.s32.totalorder %s13_s14, 4   ;;  %s685_s13 = smov %s687_s15 }
 0x103   :  { %12 = sbr.rel (!%p10_p5) target bundleno = 2 (0x2), region = 76 }

// kernel: self_attn_net_forward.15
= control target key start
LH: loop header
LB: loop body
LE: loop exit
PB: predicated region body
PF: predicated region fallthrough
CT: control target
= control target key end

     0   :  { %s849_s15 = smov 0   ;;  %s851_s16 = smov 0   ;;  %s926_s0 = inlined_call_operand.vmem [shape: bf16[2,4,8,8], index: 0, kind: input, shape index: {}]   ;;  %s927_s1 = inlined_call_operand.vmem [shape: bf16[2,4,8,8], index: 1, kind: input, shape index: {}]   ;;  %s928_s2 = inlined_call_operand.vmem [shape: bf16[2,4,8,8], index: 2, kind: input, shape index: {}]   ;;  %s929_s3 = inlined_call_operand.vmem [shape: f32[2,1,8], index: 3, kind: input, shape index: {}]   ;;  %s930_s4 = inlined_call_operand.vmem [shape: bf16[2,4,8,8], index: 4, kind: output, shape index: {}]  }
   0x1   :  { %s853_s17 = smov 0   ;;  %s855_s18 = smov 0  }
   0x2   :  { %s857_s19 = smov 0  }
   0x3 LB: > { %s36_s20 = sadd.s32 1, %s810_s17  ;;  %s40_s21 = sadd.s32 1, %s814_s18  ;;  %s818_s19 = sphi %s857_s19, %s14_s19   ;;  %s814_s18 = sphi %s855_s18, %s934_s18   ;;  %s810_s17 = sphi %s853_s17, %s933_s17   ;;  %s806_s16 = sphi %s851_s16, %s932_s16   ;;  %s802_s15 = sphi %s849_s15, %s931_s15  }
   0x4   : > { %p38_p0 = scmp.ge.s32.totalorder %s36_s20, 4  ;;  %p698_p1 = scmp.ge.s32.totalorder %s818_s19, 1 }
   0x5   : > { %p255_p2 = scmp.lt.s32.totalorder %s818_s19, 9 }
   0x6   : > { %s936_s20 = smov (%p38_p0, %s36_s20), 0  ;;  %s938_s21 = smov (!%p38_p0, %s40_s21), %s814_s18 }
   0x7   : > { %p256_p3 = pnand %p698_p1, %p255_p2  ;;  %p42_p4 = scmp.ge.s32.totalorder %s938_s21, 2 }
   0x8   : > { %p321_p5 = scmp.lt.s32.totalorder (!%p256_p3), %s806_s16, 1  ;;  %p323_p6 = scmp.lt.s32.totalorder (!%p256_p3), %s802_s15, 3  ;;  %vm379_vm0 = vcmask (!%p256_p3), 64512   ;;  %v820_v0 = vmov (!%p256_p3), 0.0   ;;  %vm821_vm1 = vmmov (!%p256_p3), 0   ;;  %vm376_vm2 = vcmask (!%p256_p3), 7168  }
   0x9   : > { %s940_s21 = smov (%p42_p4, %s938_s21), 0  ;;  %259 = sbr.rel (%p256_p3) target bundleno = 829 (0x33d), region = 36 }
   0xa   : > { %716 = vmatprep.subr.bf16.mxu0 (!%p256_p3), %v820_v0  ;;  %380 = vst.msk [vmem:[#allocation4] sm:$0xff] (!%p256_p3), %vm379_vm0, %v820_v0  ;;  %718 = vmatprep.mubr.msk.bf16.mxu0 (!%p256_p3), %vm821_vm1, %v820_v0  ;;  %v822_v4 = vmov (!%p256_p3), -inf   ;;  %v823_v12 = vmov (!%p256_p3), 0   ;;  %vm473_vm3 = vcmask (!%p256_p3), 1043456   ;;  %vm533_vm4 = vcmask (!%p256_p3), 60416  }
   0xb   : > { %722 = vmatprep.subr.bf16.mxu1 (!%p256_p3), %v820_v0  ;;  %724 = vmatprep.mubr.msk.bf16.mxu1 (!%p256_p3), %vm821_vm1, %v820_v0  ;;  %377 = vst.msk [vmem:[#allocation2] sm:$0xff] (!%p256_p3), %vm376_vm2, %v822_v4  ;;  %378 = vst.msk [vmem:[#allocation3] sm:$0xff] (!%p256_p3), %vm376_vm2, %v820_v0 }
   0xc   : > { %772 = vset.pattern.permute.xlu0 (!%p256_p3), %v823_v12  ;;  %773 = vset.pattern.permute.xlu1 (!%p256_p3), %v823_v12 }
  0x10   : > { %s942_s16 = smov (!%p321_p5, %s806_s16), 1  ;;  %s944_s15 = smov (!%p323_p6, %s802_s15), 3 }
  0x11   : > { %s699_s22 = sshll.u32 %s942_s16, 2  ;;  %s359_s7 = scalar_lea.vmem %s929_s3, %s942_s16  ;;  %v462_v33 = vld [vmem:[#allocation4] sm:$0xff] }
  0x12   : > { %s329_s23 = sadd.s32 %s699_s22, %s944_s15  ;;  %v707_v5 = vld [vmem:[%s359_s7] ss:$0 sm:$0xff]  ;;  %v454_v27 = vld [vmem:[#allocation3] sm:$0xff] }
  0x13   : > { %s880_s24 = sshll.u32 %s329_s23, 2  ;;  %v438_v13 = vld [vmem:[#allocation2] sm:$0xff] }
  0x14   : > { %s342_s27 = scalar_lea.vmem %s927_s1, %s880_s24  ;;  %s331_s30 = scalar_lea.vmem %s926_s0, %s880_s24 }
  0x15   : > { %v382_v1 = vld [vmem:[%s342_s27] sm:$0xf]  ;;  %s353_s10 = scalar_lea.vmem %s928_s2, %s880_s24  ;;  %s370_s13 = scalar_lea.vmem %s930_s4, %s880_s24 }
  0x16   : > { %v396_v2 = vsel %vm379_vm0, %v382_v1, 0  ;;  %v381_v3 = vld [vmem:[%s331_s30] sm:$0xf] }
  0x17   : > { %717 = vmatpush3.bf16.xpose.msra.mxu0 %v396_v2  ;;  %v383_v17 = vld [vmem:[%s353_s10] sm:$0xf] }
  0x18   : > { %v475_v18 = vsel %vm473_vm3, %v383_v17, 0 }
  0x19   : > { %723 = vmatpush3.bf16.msra.mxu1 %v475_v18 }
  0x1e   : > { %719 = vmatmul.mubr.msk.bf16.vlgmr.msra.gmra.mrb[0].mxu0 %vm379_vm0, %v381_v3 }
  0xf1   : > { %v432_v6 = vpop.f32.mrb[0].mxu0 }
  0xf2   : > { %v433_v7 = vadd.f32 %v707_v5, %v432_v6  ;;  %v720_v8 = vpop.f32.mrb[1].mxu0 }
  0xf3   : > { %v435_v9 = vpop.f32.mrb[2].mxu0 }
  0xf4   : > { %v721_v10 = vpop.f32.mrb[3].mxu0  ;;  %v439_v11 = vsel %vm379_vm0, %v433_v7, -inf }
  0xf5   : > { %440 = vmax.xlane.f32.xlu0 %v439_v11 }
 0x182   : > { %v441_v14 = vpop.xlane.xlu0 %440 }
 0x183   : > { %v442_v15 = vmax.f32 %v438_v13, %v441_v14 }
 0x185   : > { %v443_v16 = vsub.f32 %v438_v13, %v442_v15  ;;  %519 = vst.msk [vmem:[#allocation2] sm:$0xff] %vm376_vm2, %v442_v15  ;;  %448 = vperm.xlu0 %772, %v442_v15  }
 0x187   : > { %v444_v25 = vmul.f32 1.442695, %v443_v16 }
 0x204   : > { %v449_v19 = vpop.permute.xlu0 %448 }
 0x205   : > { %v451_v20 = vsub.f32 %v433_v7, %v449_v19 }
 0x207   : > { %v452_v21 = vmul.f32 1.442695, %v451_v20 }
 0x209   : > { %774 = vpow2.f32 %v452_v21 }
 0x20a   : > { %776 = vpow2.f32 %v444_v25 }
 0x213   : > { %v775_v22 = vpop.eup %774 }
 0x214   : > { %v456_v23 = vsel %vm379_vm0, %v775_v22, 0.0  ;;  %v469_v24 = vpack.c.bf16 %v775_v22, %v775_v22  ;;  %v777_v26 = vpop.eup %776 }
 0x215   : > { %457 = vadd.xlane.f32.xlu1 %v456_v23  ;;  %v455_v28 = vmul.f32 %v777_v26, %v454_v27 }
 0x216   : > { %725 = vmatmul.mubr.msk.bf16.vlgmr.msra.gmra.mrb[0].mxu1 %vm379_vm0, %v469_v24 }
 0x226   : > { %465 = vperm.xlu1 %773, %v777_v26  }
 0x2a2   : > { %v458_v29 = vpop.xlane.xlu1 %457 }
 0x2a3   : > { %v459_v30 = vadd.f32 %v458_v29, %v455_v28 }
 0x2a5   : > { %461 = vst.msk [vmem:[#allocation3] sm:$0xff] %vm376_vm2, %v459_v30 }
 0x2a6   : > { %v466_v34 = vpop.permute.xlu1 %465 }
 0x2a7   : > { %v468_v35 = vmul.f32 %v466_v34, %v462_v33 }
 0x2ac   : > { %v523_v31 = vld [vmem:[#allocation3] sm:$0xff] }
 0x2ad   : > { %778 = vrcp.f32 %v523_v31 }
 0x2b7   : > { %v779_v32 = vpop.eup %778 }
 0x2b8   : > { %528 = vperm.xlu1 %773, %v779_v32  }
 0x2e9   : > { %v511_v36 = vpop.f32.mrb[0].mxu1 }
 0x2ea   : > { %v517_v37 = vadd.f32 %v511_v36, %v468_v35  ;;  %v726_v38 = vpop.f32.mrb[1].mxu1 }
 0x2eb   : > { %v514_v39 = vpop.f32.mrb[2].mxu1 }
 0x2ec   : > { %518 = vst.msk [vmem:[#allocation4] sm:$0xff] %vm379_vm0, %v517_v37  ;;  %v727_v40 = vpop.f32.mrb[3].mxu1 }
 0x2f3   : > { %v525_v41 = vld [vmem:[#allocation4] sm:$0xff] }
 0x337   : > { %v529_v42 = vpop.permute.xlu1 %528 }
 0x338   : > { %v531_v43 = vmul.f32 %v529_v42, %v525_v41 }
 0x33a   : > { %v532_v44 = vpack.c.bf16 %v531_v43, %v531_v43 }
 0x33c   : > { %534 = vst.msk [vmem:[%s370_s13] sm:$0xf] %vm533_vm4, %v532_v44 }
 0x33d PF: > { %s14_s19 = sadd.s32 1, %s818_s19   ;;  %s931_s15 = smov %s810_s17 }
 0x33e   : > { %p11_p7 = scmp.ge.s32.totalorder %s14_s19, 10   ;;  %s932_s16 = smov %s814_s18 }
 0x33f   : > { %s933_s17 = smov %s936_s20  ;;  %s934_s18 = smov %s940_s21 }
 0x340   :  { %13 = sbr.rel (!%p11_p7) target bundleno = 3 (0x3), region = 83 }

// kernel: self_attn_net_forward.16
= control target key start
LH: loop header
LB: loop body
LE: loop exit
PB: predicated region body
PF: predicated region fallthrough
CT: control target
= control target key end

     0   :  { %s713_s21 = smov 0   ;;  %s715_s22 = smov 0   ;;  %s795_s0 = inlined_call_operand.vmem [shape: bf16[16,128], index: 0, kind: input, shape index: {}]   ;;  %s796_s1 = inlined_call_operand.vmem [shape: bf16[128,32], index: 1, kind: input, shape index: {}]   ;;  %s797_s2 = inlined_call_operand.vmem [shape: f32[1,32], index: 2, kind: input, shape index: {}]   ;;  %s798_s3 = inlined_call_operand.vmem [shape: bf16[16,32], index: 3, kind: input, shape index: {}]   ;;  %s799_s4 = inlined_call_operand.vmem [shape: f32[1,32], index: 4, kind: input, shape index: {}]   ;;  %s800_s5 = inlined_call_operand.vmem [shape: f32[1,32], index: 5, kind: input, shape index: {}]   ;;  %s801_s6 = inlined_call_operand.vmem [shape: bf16[16,32], index: 6, kind: output, shape index: {}]  }
   0x1   :  { %s717_s23 = smov 0  }
   0x2 LB: > { %s28_s24 = sadd.s32 1, %s670_s22  ;;  %p570_p0 = scmp.ge.s32.totalorder %s674_s23, 1  ;;  %s674_s23 = sphi %s717_s23, %s16_s23   ;;  %s670_s22 = sphi %s715_s22, %s803_s22   ;;  %s666_s21 = sphi %s713_s21, %s802_s21  }
   0x3   : > { %p30_p1 = scmp.ge.s32.totalorder %s28_s24, 2  ;;  %p248_p2 = scmp.lt.s32.totalorder %s674_s23, 3 }
   0x5   : > { %s805_s24 = smov (%p30_p1, %s28_s24), 0  ;;  %p249_p3 = pnand %p570_p0, %p248_p2 }
   0x6   : > { %v642_v0 = vld [vmem:[%s796_s1] sm:$0xff] (!%p249_p3)   ;;  %v676_v1 = vmov (!%p249_p3), 0.0   ;;  %v643_v2 = vld [vmem:[%s796_s1 + $0x8] sm:$0xff] (!%p249_p3)   ;;  %vm677_vm0 = vmmov (!%p249_p3), 0   ;;  %vm314_vm1 = vcmask (!%p249_p3), 261120   ;;  %v644_v3 = vld [vmem:[%s796_s1 + $0x10] sm:$0xff] (!%p249_p3)  }
   0x7   : > { %252 = sbr.rel (%p249_p3) target bundleno = 581 (0x245), region = 44  ;;  %596 = vmatprep.subr.bf16.mxu0 (!%p249_p3), %v676_v1  ;;  %612 = vmatprep.mubr.msk.bf16.mxu0 (!%p249_p3), %vm677_vm0, %v676_v1  ;;  %315 = vst.msk [vmem:[#allocation2] sm:$0xff] (!%p249_p3), %vm314_vm1, %v676_v1  ;;  %v645_v4 = vld [vmem:[%s796_s1 + $0x18] sm:$0xff] (!%p249_p3)   ;;  %v646_v5 = vld [vmem:[%s796_s1 + $0x20] sm:$0xff] (!%p249_p3)   ;;  %p288_p4 = scmp.lt.s32.totalorder (!%p249_p3), %s666_s21, 1  ;;  %v647_v6 = vld [vmem:[%s796_s1 + $0x28] sm:$0xff] (!%p249_p3)  }
   0x8   : > { %597 = vmatpush3.bf16.msra.mxu0 (!%p249_p3), %v642_v0  ;;  %v648_v7 = vld [vmem:[%s796_s1 + $0x30] sm:$0xff] (!%p249_p3)   ;;  %v649_v8 = vld [vmem:[%s796_s1 + $0x38] sm:$0xff] (!%p249_p3)   ;;  %v582_v17 = vld [vmem:[%s797_s2] ss:$0 sm:$0xff] (!%p249_p3)  ;;  %vm471_vm2 = vcmask (!%p249_p3), 257024  }
   0x9   : > { %598 = vmatprep.subr.bf16.mxu0 (!%p249_p3), %v676_v1  ;;  %v583_v32 = vld [vmem:[%s799_s4] ss:$0 sm:$0xff] (!%p249_p3) }
   0xa   : > { %v584_v34 = vld [vmem:[%s800_s5] ss:$0 sm:$0xff] (!%p249_p3) }
   0xc   : > { %599 = vmatpush3.bf16.msra.mxu0 (!%p249_p3), %v643_v2 }
   0xd   : > { %600 = vmatprep.subr.bf16.mxu0 (!%p249_p3), %v676_v1 }
   0xe   : > { %s807_s21 = smov (!%p288_p4, %s666_s21), 1  ;;  %v316_v10 = vld [vmem:[#allocation2] sm:$0xff] }
   0xf   : > { %s757_s15 = sshll.u32 %s807_s21, 2 }
  0x10   : > { %601 = vmatpush3.bf16.msra.mxu0 %v644_v3  ;;  %s294_s20 = scalar_lea.vmem %s795_s0, %s757_s15  ;;  %s304_s26 = scalar_lea.vmem %s798_s3, %s757_s15 }
  0x11   : > { %602 = vmatprep.subr.bf16.mxu0 %v676_v1  ;;  %v317_v9 = vld [vmem:[%s294_s20] sm:$0xf]  ;;  %s308_s11 = scalar_lea.vmem %s801_s6, %s757_s15 }
  0x12   : > { %v437_v16 = vld [vmem:[%s304_s26] sm:$0xf] }
  0x13   : > { %v438_v18 = vunpack.c.l.bf16 %v437_v16 }
  0x14   : > { %603 = vmatpush3.bf16.msra.mxu0 %v645_v4 }
  0x15   : > { %604 = vmatprep.subr.bf16.mxu0 %v676_v1 }
  0x18   : > { %605 = vmatpush3.bf16.msra.mxu0 %v646_v5 }
  0x19   : > { %606 = vmatprep.subr.bf16.mxu0 %v676_v1 }
  0x1c   : > { %607 = vmatpush3.bf16.msra.mxu0 %v647_v6 }
  0x1d   : > { %608 = vmatprep.subr.bf16.mxu0 %v676_v1 }
  0x20   : > { %609 = vmatpush3.bf16.msra.mxu0 %v648_v7 }
  0x21   : > { %610 = vmatprep.subr.bf16.mxu0 %v676_v1 }
  0x24   : > { %611 = vmatpush3.bf16.msra.mxu0 %v649_v8 }
  0x27   : > { %613 = vmatmul.mubr.bf16.vlgmr.msra.gmra.mrb[0].mxu0 %v317_v9 }
  0xfa   : > { %v416_v11 = vpop.f32.mrb[0].mxu0 }
  0xfb   : > { %v422_v12 = vadd.f32 %v416_v11, %v316_v10  ;;  %v614_v13 = vpop.f32.mrb[1].mxu0 }
  0xfc   : > { %v419_v14 = vpop.f32.mrb[2].mxu0 }
  0xfd   : > { %424 = vst.msk [vmem:[#allocation2] sm:$0xff] %vm314_vm1, %v422_v12  ;;  %v615_v15 = vpop.f32.mrb[3].mxu0 }
 0x104   : > { %v428_v19 = vld [vmem:[#allocation2] sm:$0xff] }
 0x105   : > { %v436_v20 = vadd.f32 %v582_v17, %v428_v19 }
 0x107   : > { %v439_v21 = vadd.f32 %v438_v18, %v436_v20 }
 0x109   : > { %v440_v22 = vsel %vm314_vm1, %v439_v21, 0.0 }
 0x10a   : > { %441 = vadd.xlane.f32.xlu0 %v440_v22 }
 0x197   : > { %v442_v23 = vpop.xlane.xlu0 %441 }
 0x198   : > { %v444_v24 = vmul.f32 0.03125, %v442_v23 }
 0x19a   : > { %v445_v25 = vsub.f32 %v439_v21, %v444_v24 }
 0x19c   : > { %v446_v26 = vmul.f32 %v445_v25, %v445_v25 }
 0x19e   : > { %v447_v27 = vsel %vm314_vm1, %v446_v26, 0.0 }
 0x19f   : > { %448 = vadd.xlane.f32.xlu0 %v447_v27 }
 0x22c   : > { %v449_v28 = vpop.xlane.xlu0 %448 }
 0x22d   : > { %v450_v29 = vmul.f32 0.03125, %v449_v28 }
 0x22f   : > { %v451_v30 = vadd.f32 1e-05, %v450_v29 }
 0x231   : > { %650 = vrsqrt.f32 %v451_v30 }
 0x23b   : > { %v651_v31 = vpop.eup %650 }
 0x23c   : > { %v453_v33 = vmul.f32 %v651_v31, %v445_v25 }
 0x23e   : > { %v461_v35 = vmul.f32 %v583_v32, %v453_v33 }
 0x240   : > { %v469_v36 = vadd.f32 %v584_v34, %v461_v35 }
 0x242   : > { %v470_v37 = vpack.c.bf16 %v469_v36, %v469_v36 }
 0x244   : > { %472 = vst.msk [vmem:[%s308_s11] sm:$0xf] %vm471_vm2, %v470_v37 }
 0x245 PF: > { %s16_s23 = sadd.s32 1, %s674_s23   ;;  %s802_s21 = smov %s670_s22 }
 0x246   : > { %p13_p5 = scmp.ge.s32.totalorder %s16_s23, 4   ;;  %s803_s22 = smov %s805_s24 }
 0x248   :  { %15 = sbr.rel (!%p13_p5) target bundleno = 2 (0x2), region = 88 }

// kernel: self_attn_net_forward.17
= control target key start
LH: loop header
LB: loop body
LE: loop exit
PB: predicated region body
PF: predicated region fallthrough
CT: control target
= control target key end

     0   :  { %s617_s12 = smov 0   ;;  %s619_s13 = smov 0   ;;  %s681_s0 = inlined_call_operand.vmem [shape: bf16[16,128], index: 0, kind: input, shape index: {}]   ;;  %s682_s1 = inlined_call_operand.vmem [shape: bf16[128,128], index: 1, kind: input, shape index: {}]   ;;  %s683_s2 = inlined_call_operand.vmem [shape: f32[1,128], index: 2, kind: input, shape index: {}]   ;;  %s684_s3 = inlined_call_operand.vmem [shape: bf16[16,128], index: 3, kind: output, shape index: {}]  }
   0x1   :  { %s621_s14 = smov 0  }
   0x2 LB: > { %s32_s15 = sadd.s32 1, %s589_s13  ;;  %p494_p0 = scmp.ge.s32.totalorder %s593_s14, 1  ;;  %s593_s14 = sphi %s621_s14, %s13_s14   ;;  %s589_s13 = sphi %s619_s13, %s686_s13   ;;  %s585_s12 = sphi %s617_s12, %s685_s12  }
   0x3   : > { %p34_p1 = scmp.ge.s32.totalorder %s32_s15, 2  ;;  %p186_p2 = scmp.lt.s32.totalorder %s593_s14, 3 }
   0x5   : > { %s688_s15 = smov (%p34_p1, %s32_s15), 0  ;;  %p187_p3 = pnand %p494_p0, %p186_p2 }
   0x6   : > { %v563_v0 = vld [vmem:[%s682_s1] sm:$0xff] (!%p187_p3)   ;;  %v595_v1 = vmov (!%p187_p3), 0.0   ;;  %v564_v2 = vld [vmem:[%s682_s1 + $0x8] sm:$0xff] (!%p187_p3)   ;;  %vm596_vm0 = vmmov (!%p187_p3), 0   ;;  %v565_v3 = vld [vmem:[%s682_s1 + $0x10] sm:$0xff] (!%p187_p3)   ;;  %p225_p4 = scmp.lt.s32.totalorder (!%p187_p3), %s585_s12, 1 }
   0x7   : > { %190 = sbr.rel (%p187_p3) target bundleno = 258 (0x102), region = 32  ;;  %517 = vmatprep.subr.bf16.mxu0 (!%p187_p3), %v595_v1  ;;  %533 = vmatprep.mubr.msk.bf16.mxu0 (!%p187_p3), %vm596_vm0, %v595_v1  ;;  %v566_v4 = vld [vmem:[%s682_s1 + $0x18] sm:$0xff] (!%p187_p3)   ;;  %v567_v5 = vld [vmem:[%s682_s1 + $0x20] sm:$0xff] (!%p187_p3)   ;;  %v568_v6 = vld [vmem:[%s682_s1 + $0x28] sm:$0xff] (!%p187_p3)  }
   0x8   : > { %518 = vmatpush3.bf16.msra.mxu0 (!%p187_p3), %v563_v0  ;;  %v569_v7 = vld [vmem:[%s682_s1 + $0x30] sm:$0xff] (!%p187_p3)   ;;  %v570_v8 = vld [vmem:[%s682_s1 + $0x38] sm:$0xff] (!%p187_p3)   ;;  %v505_v10 = vld [vmem:[%s683_s2] ss:$0 sm:$0xff] (!%p187_p3) }
   0x9   : > { %519 = vmatprep.subr.bf16.mxu0 (!%p187_p3), %v595_v1 }
   0xc   : > { %520 = vmatpush3.bf16.msra.mxu0 (!%p187_p3), %v564_v2 }
   0xd   : > { %521 = vmatprep.subr.bf16.mxu0 (!%p187_p3), %v595_v1 }
   0xe   : > { %s690_s12 = smov (!%p225_p4, %s585_s12), 1 }
   0xf   : > { %s495_s30 = sshll.u32 %s690_s12, 2 }
  0x10   : > { %522 = vmatpush3.bf16.msra.mxu0 %v565_v3  ;;  %s231_s8 = scalar_lea.vmem %s681_s0, %s495_s30  ;;  %s250_s16 = scalar_lea.vmem %s684_s3, %s495_s30 }
  0x11   : > { %523 = vmatprep.subr.bf16.mxu0 %v595_v1  ;;  %v258_v9 = vld [vmem:[%s231_s8] sm:$0xf] }
  0x14   : > { %524 = vmatpush3.bf16.msra.mxu0 %v566_v4 }
  0x15   : > { %525 = vmatprep.subr.bf16.mxu0 %v595_v1 }
  0x18   : > { %526 = vmatpush3.bf16.msra.mxu0 %v567_v5 }
  0x19   : > { %527 = vmatprep.subr.bf16.mxu0 %v595_v1 }
  0x1c   : > { %528 = vmatpush3.bf16.msra.mxu0 %v568_v6 }
  0x1d   : > { %529 = vmatprep.subr.bf16.mxu0 %v595_v1 }
  0x20   : > { %530 = vmatpush3.bf16.msra.mxu0 %v569_v7 }
  0x21   : > { %531 = vmatprep.subr.bf16.mxu0 %v595_v1 }
  0x24   : > { %532 = vmatpush3.bf16.msra.mxu0 %v570_v8 }
  0x27   : > { %534 = vmatmul.mubr.bf16.vlgmr.msra.gmra.mrb[0].mxu0 %v258_v9 }
  0xfa   : > { %v357_v11 = vpop.f32.mrb[0].mxu0 }
  0xfb   : > { %v376_v12 = vadd.f32 %v505_v10, %v357_v11  ;;  %v535_v13 = vpop.f32.mrb[1].mxu0 }
  0xfc   : > { %v360_v14 = vpop.f32.mrb[2].mxu0 }
  0xfd   : > { %v377_v15 = vmax.f32 %v376_v12, 0.0  ;;  %v536_v16 = vpop.f32.mrb[3].mxu0 }
  0xff   : > { %v378_v17 = vpack.c.bf16 %v377_v15, %v377_v15 }
 0x101   : > { %379 = vst [vmem:[%s250_s16] sm:$0xf] %v378_v17 }
 0x102 PF: > { %s13_s14 = sadd.s32 1, %s593_s14   ;;  %s685_s12 = smov %s589_s13 }
 0x103   : > { %p10_p5 = scmp.ge.s32.totalorder %s13_s14, 4   ;;  %s686_s13 = smov %s688_s15 }
 0x105   :  { %12 = sbr.rel (!%p10_p5) target bundleno = 2 (0x2), region = 76 }

// kernel: self_attn_net_forward.24
= control target key start
LH: loop header
LB: loop body
LE: loop exit
PB: predicated region body
PF: predicated region fallthrough
CT: control target
= control target key end

     0   :  { %s304_s12 = smov 0   ;;  %s327_s0 = inlined_call_operand.vmem [shape: bf16[16,32], index: 0, kind: input, shape index: {}]   ;;  %s328_s1 = inlined_call_operand.vmem [shape: f32[1,32], index: 1, kind: input, shape index: {}]   ;;  %s329_s2 = inlined_call_operand.vmem [shape: f32[1,32], index: 2, kind: input, shape index: {}]   ;;  %s330_s3 = inlined_call_operand.vmem [shape: bf16[16,32], index: 3, kind: output, shape index: {}]  }
   0x1 LB: > { %s255_s13 = sadd.s32 4294967295, %s282_s12   ;;  %p259_p0 = scmp.ge.s32.totalorder %s282_s12, 1  ;;  %s282_s12 = sphi %s304_s12, %s13_s12  }
   0x2   : > { %p136_p1 = scmp.lt.s32.totalorder %s282_s12, 3 }
   0x4   : > { %p137_p2 = pnand %p259_p0, %p136_p1 }
   0x5   : > { %p158_p3 = scmp.lt.s32.totalorder (!%p137_p2), %s255_s13, 1  ;;  %vm168_vm0 = vcmask (!%p137_p2), 261120   ;;  %v262_v12 = vld [vmem:[%s328_s1] ss:$0 sm:$0xff] (!%p137_p2)  ;;  %vm200_vm1 = vcmask (!%p137_p2), 257024  }
   0x6   : > { %140 = sbr.rel (%p137_p2) target bundleno = 335 (0x14f), region = 32  ;;  %v263_v14 = vld [vmem:[%s329_s2] ss:$0 sm:$0xff] (!%p137_p2) }
   0xd   : > { %s332_s13 = smov (!%p158_p3, %s255_s13), 1 }
   0xe   : > { %s260_s14 = sshll.u32 %s332_s13, 2 }
   0xf   : > { %s161_s17 = scalar_lea.vmem %s327_s0, %s260_s14  ;;  %s165_s24 = scalar_lea.vmem %s330_s3, %s260_s14 }
  0x10   : > { %v166_v0 = vld [vmem:[%s161_s17] sm:$0xf] }
  0x11   : > { %v167_v1 = vunpack.c.l.bf16 %v166_v0 }
  0x13   : > { %v169_v2 = vsel %vm168_vm0, %v167_v1, 0.0 }
  0x14   : > { %170 = vadd.xlane.f32.xlu0 %v169_v2 }
  0xa1   : > { %v171_v3 = vpop.xlane.xlu0 %170 }
  0xa2   : > { %v173_v4 = vmul.f32 0.03125, %v171_v3 }
  0xa4   : > { %v174_v5 = vsub.f32 %v167_v1, %v173_v4 }
  0xa6   : > { %v175_v6 = vmul.f32 %v174_v5, %v174_v5 }
  0xa8   : > { %v176_v7 = vsel %vm168_vm0, %v175_v6, 0.0 }
  0xa9   : > { %177 = vadd.xlane.f32.xlu0 %v176_v7 }
 0x136   : > { %v178_v8 = vpop.xlane.xlu0 %177 }
 0x137   : > { %v179_v9 = vmul.f32 0.03125, %v178_v8 }
 0x139   : > { %v180_v10 = vadd.f32 1e-05, %v179_v9 }
 0x13b   : > { %274 = vrsqrt.f32 %v180_v10 }
 0x145   : > { %v275_v11 = vpop.eup %274 }
 0x146   : > { %v182_v13 = vmul.f32 %v275_v11, %v174_v5 }
 0x148   : > { %v190_v15 = vmul.f32 %v262_v12, %v182_v13 }
 0x14a   : > { %v198_v16 = vadd.f32 %v263_v14, %v190_v15 }
 0x14c   : > { %v199_v17 = vpack.c.bf16 %v198_v16, %v198_v16 }
 0x14e   : > { %201 = vst.msk [vmem:[%s165_s24] sm:$0xf] %vm200_vm1, %v199_v17 }
 0x14f PF: > { %s13_s12 = sadd.s32 1, %s282_s12  }
 0x150   : > { %p10_p4 = scmp.ge.s32.totalorder %s13_s12, 4  }
 0x152   :  { %12 = sbr.rel (!%p10_p4) target bundleno = 1 (0x1), region = 62 }

// kernel: self_attn_net_forward.25
= control target key start
LH: loop header
LB: loop body
LE: loop exit
PB: predicated region body
PF: predicated region fallthrough
CT: control target
= control target key end

     0   :  { %s615_s12 = smov 0   ;;  %s617_s13 = smov 0   ;;  %s679_s0 = inlined_call_operand.vmem [shape: bf16[16,128], index: 0, kind: input, shape index: {}]   ;;  %s680_s1 = inlined_call_operand.vmem [shape: bf16[128,128], index: 1, kind: input, shape index: {}]   ;;  %s681_s2 = inlined_call_operand.vmem [shape: f32[1,128], index: 2, kind: input, shape index: {}]   ;;  %s682_s3 = inlined_call_operand.vmem [shape: f32[16,128], index: 3, kind: output, shape index: {}]  }
   0x1   :  { %s619_s14 = smov 0  }
   0x2 LB: > { %s32_s15 = sadd.s32 1, %s587_s13  ;;  %p492_p0 = scmp.ge.s32.totalorder %s591_s14, 1  ;;  %s591_s14 = sphi %s619_s14, %s13_s14   ;;  %s587_s13 = sphi %s617_s13, %s684_s13   ;;  %s583_s12 = sphi %s615_s12, %s683_s12  }
   0x3   : > { %p34_p1 = scmp.ge.s32.totalorder %s32_s15, 2  ;;  %p186_p2 = scmp.lt.s32.totalorder %s591_s14, 3 }
   0x5   : > { %s686_s15 = smov (%p34_p1, %s32_s15), 0  ;;  %p187_p3 = pnand %p492_p0, %p186_p2 }
   0x6   : > { %v561_v0 = vld [vmem:[%s680_s1] sm:$0xff] (!%p187_p3)   ;;  %v593_v1 = vmov (!%p187_p3), 0.0   ;;  %v562_v2 = vld [vmem:[%s680_s1 + $0x8] sm:$0xff] (!%p187_p3)   ;;  %vm594_vm0 = vmmov (!%p187_p3), 0   ;;  %v563_v3 = vld [vmem:[%s680_s1 + $0x10] sm:$0xff] (!%p187_p3)   ;;  %p225_p4 = scmp.lt.s32.totalorder (!%p187_p3), %s583_s12, 1 }
   0x7   : > { %190 = sbr.rel (%p187_p3) target bundleno = 254 (0xfe), region = 32  ;;  %515 = vmatprep.subr.bf16.mxu0 (!%p187_p3), %v593_v1  ;;  %531 = vmatprep.mubr.msk.bf16.mxu0 (!%p187_p3), %vm594_vm0, %v593_v1  ;;  %v564_v4 = vld [vmem:[%s680_s1 + $0x18] sm:$0xff] (!%p187_p3)   ;;  %v565_v5 = vld [vmem:[%s680_s1 + $0x20] sm:$0xff] (!%p187_p3)   ;;  %v566_v6 = vld [vmem:[%s680_s1 + $0x28] sm:$0xff] (!%p187_p3)  }
   0x8   : > { %516 = vmatpush3.bf16.msra.mxu0 (!%p187_p3), %v561_v0  ;;  %v567_v7 = vld [vmem:[%s680_s1 + $0x30] sm:$0xff] (!%p187_p3)   ;;  %v568_v8 = vld [vmem:[%s680_s1 + $0x38] sm:$0xff] (!%p187_p3)   ;;  %v503_v10 = vld [vmem:[%s681_s2] ss:$0 sm:$0xff] (!%p187_p3) }
   0x9   : > { %517 = vmatprep.subr.bf16.mxu0 (!%p187_p3), %v593_v1 }
   0xc   : > { %518 = vmatpush3.bf16.msra.mxu0 (!%p187_p3), %v562_v2 }
   0xd   : > { %519 = vmatprep.subr.bf16.mxu0 (!%p187_p3), %v593_v1 }
   0xe   : > { %s688_s12 = smov (!%p225_p4, %s583_s12), 1 }
   0xf   : > { %s493_s30 = sshll.u32 %s688_s12, 2  ;;  %s494_s9 = sshll.u32 %s688_s12, 3 }
  0x10   : > { %520 = vmatpush3.bf16.msra.mxu0 %v563_v3  ;;  %s231_s8 = scalar_lea.vmem %s679_s0, %s493_s30  ;;  %s250_s18 = scalar_lea.vmem %s682_s3, %s494_s9 }
  0x11   : > { %521 = vmatprep.subr.bf16.mxu0 %v593_v1  ;;  %v258_v9 = vld [vmem:[%s231_s8] sm:$0xf] }
  0x14   : > { %522 = vmatpush3.bf16.msra.mxu0 %v564_v4 }
  0x15   : > { %523 = vmatprep.subr.bf16.mxu0 %v593_v1 }
  0x18   : > { %524 = vmatpush3.bf16.msra.mxu0 %v565_v5 }
  0x19   : > { %525 = vmatprep.subr.bf16.mxu0 %v593_v1 }
  0x1c   : > { %526 = vmatpush3.bf16.msra.mxu0 %v566_v6 }
  0x1d   : > { %527 = vmatprep.subr.bf16.mxu0 %v593_v1 }
  0x20   : > { %528 = vmatpush3.bf16.msra.mxu0 %v567_v7 }
  0x21   : > { %529 = vmatprep.subr.bf16.mxu0 %v593_v1 }
  0x24   : > { %530 = vmatpush3.bf16.msra.mxu0 %v568_v8 }
  0x27   : > { %532 = vmatmul.mubr.bf16.vlgmr.msra.gmra.mrb[0].mxu0 %v258_v9 }
  0xfa   : > { %v357_v11 = vpop.f32.mrb[0].mxu0 }
  0xfb   : > { %v376_v12 = vadd.f32 %v503_v10, %v357_v11  ;;  %v533_v13 = vpop.f32.mrb[1].mxu0 }
  0xfc   : > { %v360_v14 = vpop.f32.mrb[2].mxu0 }
  0xfd   : > { %377 = vst [vmem:[%s250_s18] sm:$0xff] %v376_v12  ;;  %v534_v15 = vpop.f32.mrb[3].mxu0 }
  0xfe PF: > { %s13_s14 = sadd.s32 1, %s591_s14   ;;  %s683_s12 = smov %s587_s13 }
  0xff   : > { %p10_p5 = scmp.ge.s32.totalorder %s13_s14, 4   ;;  %s684_s13 = smov %s686_s15 }
 0x101   :  { %12 = sbr.rel (!%p10_p5) target bundleno = 2 (0x2), region = 76 }

</bundles_post_ra>
